<compile_context>
chip_gen: v7x
topology: tpu7x:2x2x1
jax: 0.10.0
libtpu: 0.0.40
codegen_flags: <defaults>
</compile_context>

<pallas_src>
import jax
import jax.numpy as jnp
from jax import lax
from jax.experimental import pallas as pl
from jax.experimental.pallas import tpu as pltpu


# ----------------------------- Pallas kernels ------------------------------ #

def _lstm_linear_kernel(x_ref, wih_ref, whh_ref, b_ref, wlin_ref, blin_ref,
                        out_ref, h_scr, c_scr, gx_scr, h_all):
    """Unidirectional single-layer LSTM over the leading (time) axis fused with a
    Linear projection of every hidden state.

    x_ref: [T, Bt, N] -> out_ref: [T, Bt, Nout].
    The x @ W_ih projection and the output Linear are batched over all T steps
    (two big MXU matmuls); only h @ W_hh stays inside the serial recurrence.
    """
    T, Bt, N = x_ref.shape
    H = whh_ref.shape[0]
    Nout = out_ref.shape[2]

    # ---- hoisted input projection: one [T*Bt, N] @ [N, 4H] matmul + bias (once) ----
    x2d = x_ref[...].reshape(T * Bt, N)
    gx = (jnp.dot(x2d, wih_ref[...], preferred_element_type=jnp.float32)
          + b_ref[...])                                  # [T*Bt, 4H] fp32
    gx_scr[...] = gx.reshape(T, Bt, 4 * H)

    h_scr[...] = jnp.zeros_like(h_scr)
    c_scr[...] = jnp.zeros_like(c_scr)

    def step(t, carry):
        h = h_scr[...]                                   # fp32 state
        c = c_scr[...]
        gates = gx_scr[t] + jnp.dot(h.astype(whh_ref.dtype), whh_ref[...],
                                    preferred_element_type=jnp.float32)
        # TODO(synk): with H=32 the i/f/g/o slices are 32-lane sub-slices of one
        # 128-lane vreg; padding H to 128 (zero-padded weight columns) would make
        # them lane-aligned and is left out here for clarity.
        i = jax.nn.sigmoid(gates[:, 0 * H:1 * H])
        f = jax.nn.sigmoid(gates[:, 1 * H:2 * H])
        g = jnp.tanh(gates[:, 2 * H:3 * H])
        o = jax.nn.sigmoid(gates[:, 3 * H:4 * H])
        c_new = f * c + i * g
        h_new = o * jnp.tanh(c_new)
        h_scr[...] = h_new
        c_scr[...] = c_new
        h_all[t] = h_new                                 # VMEM, projected after the loop
        return carry

    lax.fori_loop(0, T, step, 0, unroll=True if T <= 32 else 4)

    # ---- deferred output Linear: one [T*Bt, H] @ [H, Nout] matmul, single store ----
    h2d = h_all[...].reshape(T * Bt, H).astype(wlin_ref.dtype)
    y = (jnp.dot(h2d, wlin_ref[...], preferred_element_type=jnp.float32)
         + blin_ref[...])
    out_ref[...] = y.reshape(T, Bt, Nout).astype(out_ref.dtype)


def _groupnorm_add_kernel(y_ref, res_ref, gamma_ref, beta_ref, out_ref):
    """GroupNorm(num_groups=1, eps=1e-8, biased variance) + residual, computed directly
    in the time-major layout. One block = every element of one batch sample: [T, G, N]."""
    y = y_ref[...]
    mean = jnp.mean(y, axis=(0, 1, 2), keepdims=True)
    var = jnp.mean(jnp.square(y - mean), axis=(0, 1, 2), keepdims=True)
    y_n = (y - mean) * lax.rsqrt(var + 1e-8)
    out_ref[...] = (y_n * gamma_ref[...] + beta_ref[...]
                    + res_ref[...]).astype(out_ref.dtype)


# ------------------------------ Wrappers ----------------------------------- #

def lstm_linear(x_tm, wih_t, whh_t, b, wlin_t, blin, *,
                compute_dtype=jnp.bfloat16, bt_tile=None):
    """x_tm: [T, Bt, N] fp32 -> [T, Bt, Nout] fp32 (LSTM over T + Linear)."""
    T, Bt, N = x_tm.shape
    H = whh_t.shape[0]
    Nout = wlin_t.shape[1]

    if bt_tile is None:
        bt_tile = Bt if Bt <= 256 else 256        # bounds VMEM; rows are independent
    grid = (pl.cdiv(Bt, bt_tile),)

    # bf16 MXU inputs, fp32 accumulation (state / gate math stay fp32 in-kernel).
    x_c = x_tm.astype(compute_dtype)
    wih_c = wih_t.astype(compute_dtype)
    whh_c = whh_t.astype(compute_dtype)
    wlin_c = wlin_t.astype(compute_dtype)
    b_f = b.astype(jnp.float32)
    blin_f = blin.astype(jnp.float32)

    csize = x_c.dtype.itemsize
    cost = pl.CostEstimate(
        flops=2 * T * Bt * (N * 4 * H + H * 4 * H + H * Nout),
        transcendentals=T * Bt * 5 * H,
        bytes_accessed=int(T * Bt * N * csize + T * Bt * Nout * 4
                           + (N + H) * 4 * H * csize + H * Nout * csize
                           + 4 * H * 4 + Nout * 4),
    )

    return pl.pallas_call(
        _lstm_linear_kernel,
        out_shape=jax.ShapeDtypeStruct((T, Bt, Nout), jnp.float32),
        grid=grid,
        in_specs=[
            pl.BlockSpec((T, bt_tile, N), lambda i: (0, i, 0)),
            pl.BlockSpec((N, 4 * H), lambda i: (0, 0)),
            pl.BlockSpec((H, 4 * H), lambda i: (0, 0)),
            pl.BlockSpec((1, 4 * H), lambda i: (0, 0)),
            pl.BlockSpec((H, Nout), lambda i: (0, 0)),
            pl.BlockSpec((1, Nout), lambda i: (0, 0)),
        ],
        out_specs=pl.BlockSpec((T, bt_tile, Nout), lambda i: (0, i, 0)),
        scratch_shapes=[
            pltpu.VMEM((bt_tile, H), jnp.float32),          # h state
            pltpu.VMEM((bt_tile, H), jnp.float32),          # c state
            pltpu.VMEM((T, bt_tile, 4 * H), jnp.float32),   # hoisted x-gates
            pltpu.VMEM((T, bt_tile, H), jnp.float32),       # hidden states for deferred Linear
        ],
        compiler_params=pltpu.CompilerParams(
            dimension_semantics=("parallel",)),
        cost_estimate=cost,
    )(x_c, wih_c, whh_c, b_f, wlin_c, blin_f)


def groupnorm_add_tm(y_tm, res_tm, gamma, beta, num_batch):
    """Time-major GroupNorm(1)+residual. y_tm/res_tm: [T, B*G, N]; statistics are taken
    per batch element b over its (T, G, N) slab (rows b*G .. b*G+G-1)."""
    T, BG, N = y_tm.shape
    B = num_batch
    G = BG // B
    cost = pl.CostEstimate(
        flops=10 * T * BG * N,
        transcendentals=B,
        bytes_accessed=int(3 * T * BG * N * 4 + 2 * N * 4),
    )
    spec = pl.BlockSpec((T, G, N), lambda b: (0, b, 0))
    # TODO(synk): for very large K*S the per-batch block may need a two-pass
    # (stats-then-normalize) scheme over L tiles to fit v7x's 64 MiB VMEM.
    return pl.pallas_call(
        _groupnorm_add_kernel,
        out_shape=jax.ShapeDtypeStruct((T, BG, N), jnp.float32),
        grid=(B,),
        in_specs=[spec, spec,
                  pl.BlockSpec((1, 1, N), lambda b: (0, 0, 0)),
                  pl.BlockSpec((1, 1, N), lambda b: (0, 0, 0))],
        out_specs=spec,
        compiler_params=pltpu.CompilerParams(
            dimension_semantics=("parallel",)),
        cost_estimate=cost,
    )(y_tm, res_tm, gamma, beta)


def dual_rnn_block(x, p, *, compute_dtype=jnp.bfloat16):
    """x: [B, N, K, S] -> out: [B, N, K, S] (matches the PyTorch forward).
    All norm/residual work stays in the time-major layout; only three layout
    transposes remain (in, intra->inter, out)."""
    B, N, K, S = x.shape

    # ---- intra path: sequence along K, rows ordered (b, s) ----
    x_tm = jnp.transpose(x, (2, 0, 3, 1)).reshape(K, B * S, N)           # [K, B*S, N]
    intra_lin = lstm_linear(x_tm, p["wih_intra"], p["whh_intra"], p["b_intra"],
                            p["wlin_intra"], p["blin_intra"],
                            compute_dtype=compute_dtype)                 # [K, B*S, N]
    intra = groupnorm_add_tm(intra_lin, x_tm,
                             p["gamma_intra"], p["beta_intra"], B)       # [K, B*S, N]

    # ---- inter path: sequence along S, rows ordered (b, k) ----
    y_tm = jnp.transpose(intra.reshape(K, B, S, N), (2, 1, 0, 3)).reshape(S, B * K, N)
    inter_lin = lstm_linear(y_tm, p["wih_inter"], p["whh_inter"], p["b_inter"],
                            p["wlin_inter"], p["blin_inter"],
                            compute_dtype=compute_dtype)                 # [S, B*K, N]
    out_tm = groupnorm_add_tm(inter_lin, y_tm,
                              p["gamma_inter"], p["beta_inter"], B)      # [S, B*K, N]

    # ---- back to [B, N, K, S] ----
    return jnp.transpose(out_tm.reshape(S, B, K, N), (1, 3, 2, 0))


# --------------------------- Pure-JAX fp32 reference ------------------------ #

def _lstm_linear_ref(x_tm, wih_t, whh_t, b, wlin_t, blin):
    T, Bt, _ = x_tm.shape
    H = whh_t.shape[0]

    def step(carry, x_t):
        h, c = carry
        gates = x_t @ wih_t + h @ whh_t + b
        i = jax.nn.sigmoid(gates[:, :H])
        f = jax.nn.sigmoid(gates[:, H:2 * H])
        g = jnp.tanh(gates[:, 2 * H:3 * H])
        o = jax.nn.sigmoid(gates[:, 3 * H:])
        c = f * c + i * g
        h = o * jnp.tanh(c)
        return (h, c), h @ wlin_t + blin

    init = (jnp.zeros((Bt, H), jnp.float32), jnp.zeros((Bt, H), jnp.float32))
    _, ys = lax.scan(step, init, x_tm)
    return ys


def _groupnorm_add_ref(y, res, gamma, beta):
    mean = jnp.mean(y, axis=(1, 2), keepdims=True)
    var = jnp.mean(jnp.square(y - mean), axis=(1, 2), keepdims=True)
    return (y - mean) * lax.rsqrt(var + 1e-8) * gamma + beta + res


def dual_rnn_block_ref(x, p):
    B, N, K, S = x.shape
    x_tm = jnp.transpose(x, (2, 0, 3, 1)).reshape(K, B * S, N)
    intra = _lstm_linear_ref(x_tm, p["wih_intra"], p["whh_intra"], p["b_intra"],
                             p["wlin_intra"], p["blin_intra"])
    intra = jnp.transpose(intra.reshape(K, B, S, N), (1, 3, 0, 2))       # [B,N,K,S]
    intra = _groupnorm_add_ref(intra.reshape(B, N, K * S), x.reshape(B, N, K * S),
                               p["gamma_intra"].reshape(1, N, 1),
                               p["beta_intra"].reshape(1, N, 1)).reshape(B, N, K, S)
    y_tm = jnp.transpose(intra, (3, 0, 2, 1)).reshape(S, B * K, N)
    inter = _lstm_linear_ref(y_tm, p["wih_inter"], p["whh_inter"], p["b_inter"],
                             p["wlin_inter"], p["blin_inter"])
    inter = jnp.transpose(inter.reshape(S, B, K, N), (1, 3, 2, 0))       # [B,N,K,S]
    return _groupnorm_add_ref(inter.reshape(B, N, K * S), intra.reshape(B, N, K * S),
                              p["gamma_inter"].reshape(1, N, 1),
                              p["beta_inter"].reshape(1, N, 1)).reshape(B, N, K, S)


# --------------------------------- Main ------------------------------------- #

def make_params(key, N, H):
    scale = 1.0 / jnp.sqrt(jnp.float32(H))
    ks = jax.random.split(key, 16)

    def u(k, shape):
        return jax.random.uniform(k, shape, jnp.float32, -scale, scale)

    return {
        # intra LSTM (N -> H), stored pre-transposed for x @ W; PyTorch gate order i,f,g,o
        "wih_intra": u(ks[0], (N, 4 * H)),
        "whh_intra": u(ks[1], (H, 4 * H)),
        "b_intra":   u(ks[2], (1, 4 * H)),      # b_ih + b_hh folded
        "wlin_intra": u(ks[3], (H, N)),
        "blin_intra": u(ks[4], (1, N)),
        "gamma_intra": 1.0 + 0.1 * jax.random.normal(ks[5], (1, 1, N), jnp.float32),
        "beta_intra":  0.1 * jax.random.normal(ks[6], (1, 1, N), jnp.float32),
        # inter LSTM
        "wih_inter": u(ks[7], (N, 4 * H)),
        "whh_inter": u(ks[8], (H, 4 * H)),
        "b_inter":   u(ks[9], (1, 4 * H)),
        "wlin_inter": u(ks[10], (H, N)),
        "blin_inter": u(ks[11], (1, N)),
        "gamma_inter": 1.0 + 0.1 * jax.random.normal(ks[12], (1, 1, N), jnp.float32),
        "beta_inter":  0.1 * jax.random.normal(ks[13], (1, 1, N), jnp.float32),
    }


if __name__ == "__main__":
    B, N, K, S = 2, 16, 8, 8     # out_channels = N = 16
    H = 32                       # hidden_channels

    key = jax.random.PRNGKey(0)
    kx, kp = jax.random.split(key)
    x = jax.random.normal(kx, (B, N, K, S), jnp.float32)
    params = make_params(kp, N, H)

    out = jax.block_until_ready(jax.jit(dual_rnn_block)(x, params))
    ref = jax.block_until_ready(jax.jit(dual_rnn_block_ref)(x, params))

    assert out.shape == (B, N, K, S)
    assert bool(jnp.all(jnp.isfinite(out)))
    # Kernel uses bf16 MXU inputs with fp32 accumulation; reference is pure fp32.
    assert bool(jnp.allclose(out, ref, rtol=2e-2, atol=2e-2)), \
        f"max abs diff {float(jnp.max(jnp.abs(out - ref)))}"

    print("KERNEL_OK")
</pallas_src>

<mosaic_0001>
module attributes {stable_mosaic.version = 11 : i64} {
  func.func @_groupnorm_add_kernel(%arg0: i32, %arg1: memref<8x8x16xf32, #tpu.memory_space<vmem>>, %arg2: memref<8x8x16xf32, #tpu.memory_space<vmem>>, %arg3: memref<1x1x16xf32, #tpu.memory_space<vmem>>, %arg4: memref<1x1x16xf32, #tpu.memory_space<vmem>>, %arg5: memref<8x8x16xf32, #tpu.memory_space<vmem>>) attributes {dimension_semantics = [#tpu.dimension_semantics<parallel>], iteration_bounds = array<i64: 2>, scalar_prefetch = 0 : i64, scratch_operands = 0 : i64, tpu.core_type = #tpu.core_type<tc>, window_params = [{transform_indices = @transform_0, window_bounds = array<i64: 8, 8, 16>}, {transform_indices = @transform_1, window_bounds = array<i64: 8, 8, 16>}, {pipeline_mode = #tpu.pipeline_mode<synchronous>, transform_indices = @transform_2, window_bounds = array<i64: 1, 1, 16>}, {pipeline_mode = #tpu.pipeline_mode<synchronous>, transform_indices = @transform_3, window_bounds = array<i64: 1, 1, 16>}, {transform_indices = @transform_4, window_bounds = array<i64: 8, 8, 16>}]} {
    %c0 = arith.constant 0 : index
    %c0_0 = arith.constant 0 : index
    %c0_1 = arith.constant 0 : index
    %0 = vector.load %arg1[%c0, %c0_0, %c0_1] : memref<8x8x16xf32, #tpu.memory_space<vmem>>, vector<8x8x16xf32>
    %1 = vector.shape_cast %0 : vector<8x8x16xf32> to vector<1x8x8x16xf32>
    %cst = arith.constant dense<0.000000e+00> : vector<1xf32>
    %2 = vector.multi_reduction <add>, %1, %cst [1, 2, 3] : vector<1x8x8x16xf32> to vector<1xf32>
    %3 = vector.shape_cast %2 : vector<1xf32> to vector<1x1x1x1xf32>
    %4 = vector.extract %3[0, 0, 0, 0] : f32 from vector<1x1x1x1xf32>
    %5 = vector.broadcast %4 : f32 to vector<1x1x1xf32>
    %cst_2 = arith.constant 1.024000e+03 : f32
    %6 = vector.broadcast %cst_2 : f32 to vector<1x1x1xf32>
    %7 = arith.divf %5, %6 : vector<1x1x1xf32>
    %8 = vector.broadcast %7 : vector<1x1x1xf32> to vector<8x8x16xf32>
    %9 = arith.subf %0, %8 : vector<8x8x16xf32>
    %10 = arith.mulf %9, %9 : vector<8x8x16xf32>
    %11 = vector.shape_cast %10 : vector<8x8x16xf32> to vector<1x8x8x16xf32>
    %cst_3 = arith.constant dense<0.000000e+00> : vector<1xf32>
    %12 = vector.multi_reduction <add>, %11, %cst_3 [1, 2, 3] : vector<1x8x8x16xf32> to vector<1xf32>
    %13 = vector.shape_cast %12 : vector<1xf32> to vector<1x1x1x1xf32>
    %14 = vector.extract %13[0, 0, 0, 0] : f32 from vector<1x1x1x1xf32>
    %15 = vector.broadcast %14 : f32 to vector<1x1x1xf32>
    %cst_4 = arith.constant 1.024000e+03 : f32
    %16 = vector.broadcast %cst_4 : f32 to vector<1x1x1xf32>
    %17 = arith.divf %15, %16 : vector<1x1x1xf32>
    %18 = vector.broadcast %7 : vector<1x1x1xf32> to vector<8x8x16xf32>
    %19 = arith.subf %0, %18 : vector<8x8x16xf32>
    %cst_5 = arith.constant 9.99999993E-9 : f32
    %20 = vector.broadcast %cst_5 : f32 to vector<1x1x1xf32>
    %21 = arith.addf %17, %20 : vector<1x1x1xf32>
    %22 = math.rsqrt %21 : vector<1x1x1xf32>
    %23 = vector.broadcast %22 : vector<1x1x1xf32> to vector<8x8x16xf32>
    %24 = arith.mulf %19, %23 : vector<8x8x16xf32>
    %c0_6 = arith.constant 0 : index
    %c0_7 = arith.constant 0 : index
    %c0_8 = arith.constant 0 : index
    %25 = vector.load %arg3[%c0_6, %c0_7, %c0_8] : memref<1x1x16xf32, #tpu.memory_space<vmem>>, vector<1x1x16xf32>
    %26 = vector.broadcast %25 : vector<1x1x16xf32> to vector<8x8x16xf32>
    %27 = arith.mulf %24, %26 : vector<8x8x16xf32>
    %c0_9 = arith.constant 0 : index
    %c0_10 = arith.constant 0 : index
    %c0_11 = arith.constant 0 : index
    %28 = vector.load %arg4[%c0_9, %c0_10, %c0_11] : memref<1x1x16xf32, #tpu.memory_space<vmem>>, vector<1x1x16xf32>
    %29 = vector.broadcast %28 : vector<1x1x16xf32> to vector<8x8x16xf32>
    %30 = arith.addf %27, %29 : vector<8x8x16xf32>
    %c0_12 = arith.constant 0 : index
    %c0_13 = arith.constant 0 : index
    %c0_14 = arith.constant 0 : index
    %31 = vector.load %arg2[%c0_12, %c0_13, %c0_14] : memref<8x8x16xf32, #tpu.memory_space<vmem>>, vector<8x8x16xf32>
    %32 = arith.addf %30, %31 : vector<8x8x16xf32>
    %c0_15 = arith.constant 0 : index
    %c0_16 = arith.constant 0 : index
    %c0_17 = arith.constant 0 : index
    %33 = vector.load %arg5[%c0_15, %c0_16, %c0_17] : memref<8x8x16xf32, #tpu.memory_space<vmem>>, vector<8x8x16xf32>
    tpu.vector_store %arg5[%c0_15, %c0_16, %c0_17], %32 {strides = array<i32>} : memref<8x8x16xf32, #tpu.memory_space<vmem>>, vector<8x8x16xf32>,
    return
  }
  func.func @transform_0(%arg0: i32) -> (i32, i32, i32) {
    %c0_i32 = arith.constant 0 : i32
    %c0_i32_0 = arith.constant 0 : i32
    %c0_i32_1 = arith.constant 0 : i32
    return %c0_i32, %arg0, %c0_i32_0 : i32, i32, i32
  }
  func.func @transform_1(%arg0: i32) -> (i32, i32, i32) {
    %c0_i32 = arith.constant 0 : i32
    %c0_i32_0 = arith.constant 0 : i32
    %c0_i32_1 = arith.constant 0 : i32
    return %c0_i32, %arg0, %c0_i32_0 : i32, i32, i32
  }
  func.func @transform_2(%arg0: i32) -> (i32, i32, i32) {
    %c0_i32 = arith.constant 0 : i32
    %c0_i32_0 = arith.constant 0 : i32
    %c0_i32_1 = arith.constant 0 : i32
    %c0_i32_2 = arith.constant 0 : i32
    return %c0_i32, %c0_i32_0, %c0_i32_1 : i32, i32, i32
  }
  func.func @transform_3(%arg0: i32) -> (i32, i32, i32) {
    %c0_i32 = arith.constant 0 : i32
    %c0_i32_0 = arith.constant 0 : i32
    %c0_i32_1 = arith.constant 0 : i32
    %c0_i32_2 = arith.constant 0 : i32
    return %c0_i32, %c0_i32_0, %c0_i32_1 : i32, i32, i32
  }
  func.func @transform_4(%arg0: i32) -> (i32, i32, i32) {
    %c0_i32 = arith.constant 0 : i32
    %c0_i32_0 = arith.constant 0 : i32
    %c0_i32_1 = arith.constant 0 : i32
    return %c0_i32, %arg0, %c0_i32_0 : i32, i32, i32
  }
}

module attributes {stable_mosaic.version = 11 : i64} {
  func.func @_lstm_linear_kernel(%arg0: i32, %arg1: memref<8x16x16xbf16, #tpu.memory_space<vmem>>, %arg2: memref<16x128xbf16, #tpu.memory_space<vmem>>, %arg3: memref<32x128xbf16, #tpu.memory_space<vmem>>, %arg4: memref<1x128xf32, #tpu.memory_space<vmem>>, %arg5: memref<32x16xbf16, #tpu.memory_space<vmem>>, %arg6: memref<1x16xf32, #tpu.memory_space<vmem>>, %arg7: memref<8x16x16xf32, #tpu.memory_space<vmem>>, %arg8: memref<16x32xf32, #tpu.memory_space<vmem>>, %arg9: memref<16x32xf32, #tpu.memory_space<vmem>>, %arg10: memref<8x16x128xf32, #tpu.memory_space<vmem>>, %arg11: memref<8x16x32xf32, #tpu.memory_space<vmem>>) attributes {dimension_semantics = [#tpu.dimension_semantics<parallel>], iteration_bounds = array<i64: 1>, scalar_prefetch = 0 : i64, scratch_operands = 4 : i64, tpu.core_type = #tpu.core_type<tc>, window_params = [{transform_indices = @transform_0, window_bounds = array<i64: 8, 16, 16>}, {pipeline_mode = #tpu.pipeline_mode<synchronous>, transform_indices = @transform_1, window_bounds = array<i64: 16, 128>}, {pipeline_mode = #tpu.pipeline_mode<synchronous>, transform_indices = @transform_2, window_bounds = array<i64: 32, 128>}, {pipeline_mode = #tpu.pipeline_mode<synchronous>, transform_indices = @transform_3, window_bounds = array<i64: 1, 128>}, {pipeline_mode = #tpu.pipeline_mode<synchronous>, transform_indices = @transform_4, window_bounds = array<i64: 32, 16>}, {pipeline_mode = #tpu.pipeline_mode<synchronous>, transform_indices = @transform_5, window_bounds = array<i64: 1, 16>}, {transform_indices = @transform_6, window_bounds = array<i64: 8, 16, 16>}]} {
    %c0 = arith.constant 0 : index
    %c0_0 = arith.constant 0 : index
    %c0_1 = arith.constant 0 : index
    %0 = vector.load %arg1[%c0, %c0_0, %c0_1] : memref<8x16x16xbf16, #tpu.memory_space<vmem>>, vector<8x16x16xbf16>
    %1 = vector.shape_cast %0 : vector<8x16x16xbf16> to vector<128x16xbf16>
    %c0_2 = arith.constant 0 : index
    %c0_3 = arith.constant 0 : index
    %2 = vector.load %arg2[%c0_2, %c0_3] : memref<16x128xbf16, #tpu.memory_space<vmem>>, vector<16x128xbf16>
    %cst = arith.constant dense<0.000000e+00> : vector<128x128xf32>
    %3 = tpu.matmul %1, %2, %cst {dimension_numbers = #tpu.dot_dimension_numbers<[1], [0], [0], [1], [0, 0, 1, 1], [], []>} : vector<128x16xbf16>, vector<16x128xbf16>, vector<128x128xf32> -> vector<128x128xf32>
    %c0_4 = arith.constant 0 : index
    %c0_5 = arith.constant 0 : index
    %4 = vector.load %arg4[%c0_4, %c0_5] : memref<1x128xf32, #tpu.memory_space<vmem>>, vector<1x128xf32>
    %5 = vector.broadcast %4 : vector<1x128xf32> to vector<128x128xf32>
    %6 = arith.addf %3, %5 : vector<128x128xf32>
    %7 = vector.shape_cast %6 : vector<128x128xf32> to vector<8x16x128xf32>
    %c0_6 = arith.constant 0 : index
    %c0_7 = arith.constant 0 : index
    %c0_8 = arith.constant 0 : index
    %8 = vector.load %arg10[%c0_6, %c0_7, %c0_8] : memref<8x16x128xf32, #tpu.memory_space<vmem>>, vector<8x16x128xf32>
    tpu.vector_store %arg10[%c0_6, %c0_7, %c0_8], %7 {strides = array<i32>} : memref<8x16x128xf32, #tpu.memory_space<vmem>>, vector<8x16x128xf32>,
    %cst_9 = arith.constant 0.000000e+00 : f32
    %9 = vector.broadcast %cst_9 : f32 to vector<16x32xf32>
    %c0_10 = arith.constant 0 : index
    %c0_11 = arith.constant 0 : index
    %10 = vector.load %arg8[%c0_10, %c0_11] : memref<16x32xf32, #tpu.memory_space<vmem>>, vector<16x32xf32>
    tpu.vector_store %arg8[%c0_10, %c0_11], %9 {strides = array<i32>} : memref<16x32xf32, #tpu.memory_space<vmem>>, vector<16x32xf32>,
    %cst_12 = arith.constant 0.000000e+00 : f32
    %11 = vector.broadcast %cst_12 : f32 to vector<16x32xf32>
    %c0_13 = arith.constant 0 : index
    %c0_14 = arith.constant 0 : index
    %12 = vector.load %arg9[%c0_13, %c0_14] : memref<16x32xf32, #tpu.memory_space<vmem>>, vector<16x32xf32>
    tpu.vector_store %arg9[%c0_13, %c0_14], %11 {strides = array<i32>} : memref<16x32xf32, #tpu.memory_space<vmem>>, vector<16x32xf32>,
    %c0_i32 = arith.constant 0 : i32
    %c0_15 = arith.constant 0 : index
    %c0_16 = arith.constant 0 : index
    %13 = vector.load %arg8[%c0_15, %c0_16] : memref<16x32xf32, #tpu.memory_space<vmem>>, vector<16x32xf32>
    %c0_17 = arith.constant 0 : index
    %c0_18 = arith.constant 0 : index
    %14 = vector.load %arg9[%c0_17, %c0_18] : memref<16x32xf32, #tpu.memory_space<vmem>>, vector<16x32xf32>
    %15 = arith.index_cast %c0_i32 : i32 to index
    %c0_19 = arith.constant 0 : index
    %c0_20 = arith.constant 0 : index
    %16 = vector.load %arg10[%15, %c0_19, %c0_20] : memref<8x16x128xf32, #tpu.memory_space<vmem>>, vector<1x16x128xf32>
    %17 = vector.shape_cast %16 : vector<1x16x128xf32> to vector<16x128xf32>
    %18 = arith.truncf %13 : vector<16x32xf32> to vector<16x32xbf16>
    %c0_21 = arith.constant 0 : index
    %c0_22 = arith.constant 0 : index
    %19 = vector.load %arg3[%c0_21, %c0_22] : memref<32x128xbf16, #tpu.memory_space<vmem>>, vector<32x128xbf16>
    %cst_23 = arith.constant dense<0.000000e+00> : vector<16x128xf32>
    %20 = tpu.matmul %18, %19, %cst_23 {dimension_numbers = #tpu.dot_dimension_numbers<[1], [0], [0], [1], [0, 0, 1, 1], [], []>} : vector<16x32xbf16>, vector<32x128xbf16>, vector<16x128xf32> -> vector<16x128xf32>
    %21 = arith.addf %17, %20 : vector<16x128xf32>
    %22 = vector.extract_strided_slice %21 {offsets = [0, 0], sizes = [16, 32], strides = [1, 1]} : vector<16x128xf32> to vector<16x32xf32>
    %23 = arith.negf %22 : vector<16x32xf32>
    %24 = math.exp %23 : vector<16x32xf32>
    %cst_24 = arith.constant 1.000000e+00 : f32
    %25 = vector.broadcast %cst_24 : f32 to vector<16x32xf32>
    %26 = arith.addf %25, %24 : vector<16x32xf32>
    %27 = arith.divf %25, %26 : vector<16x32xf32>
    %28 = vector.extract_strided_slice %21 {offsets = [0, 32], sizes = [16, 32], strides = [1, 1]} : vector<16x128xf32> to vector<16x32xf32>
    %29 = arith.negf %28 : vector<16x32xf32>
    %30 = math.exp %29 : vector<16x32xf32>
    %cst_25 = arith.constant 1.000000e+00 : f32
    %31 = vector.broadcast %cst_25 : f32 to vector<16x32xf32>
    %32 = arith.addf %31, %30 : vector<16x32xf32>
    %33 = arith.divf %31, %32 : vector<16x32xf32>
    %34 = vector.extract_strided_slice %21 {offsets = [0, 64], sizes = [16, 32], strides = [1, 1]} : vector<16x128xf32> to vector<16x32xf32>
    %35 = math.tanh %34 : vector<16x32xf32>
    %36 = vector.extract_strided_slice %21 {offsets = [0, 96], sizes = [16, 32], strides = [1, 1]} : vector<16x128xf32> to vector<16x32xf32>
    %37 = arith.negf %36 : vector<16x32xf32>
    %38 = math.exp %37 : vector<16x32xf32>
    %cst_26 = arith.constant 1.000000e+00 : f32
    %39 = vector.broadcast %cst_26 : f32 to vector<16x32xf32>
    %40 = arith.addf %39, %38 : vector<16x32xf32>
    %41 = arith.divf %39, %40 : vector<16x32xf32>
    %42 = arith.mulf %33, %14 : vector<16x32xf32>
    %43 = arith.mulf %27, %35 : vector<16x32xf32>
    %44 = arith.addf %42, %43 : vector<16x32xf32>
    %45 = math.tanh %44 : vector<16x32xf32>
    %46 = arith.mulf %41, %45 : vector<16x32xf32>
    %c0_27 = arith.constant 0 : index
    %c0_28 = arith.constant 0 : index
    %47 = vector.load %arg8[%c0_27, %c0_28] : memref<16x32xf32, #tpu.memory_space<vmem>>, vector<16x32xf32>
    tpu.vector_store %arg8[%c0_27, %c0_28], %46 {strides = array<i32>} : memref<16x32xf32, #tpu.memory_space<vmem>>, vector<16x32xf32>,
    %c0_29 = arith.constant 0 : index
    %c0_30 = arith.constant 0 : index
    %48 = vector.load %arg9[%c0_29, %c0_30] : memref<16x32xf32, #tpu.memory_space<vmem>>, vector<16x32xf32>
    tpu.vector_store %arg9[%c0_29, %c0_30], %44 {strides = array<i32>} : memref<16x32xf32, #tpu.memory_space<vmem>>, vector<16x32xf32>,
    %49 = arith.index_cast %c0_i32 : i32 to index
    %c0_31 = arith.constant 0 : index
    %c0_32 = arith.constant 0 : index
    %50 = vector.load %arg11[%49, %c0_31, %c0_32] : memref<8x16x32xf32, #tpu.memory_space<vmem>>, vector<1x16x32xf32>
    %51 = vector.shape_cast %50 : vector<1x16x32xf32> to vector<16x32xf32>
    %52 = vector.shape_cast %46 : vector<16x32xf32> to vector<1x16x32xf32>
    tpu.vector_store %arg11[%49, %c0_31, %c0_32], %52 {strides = array<i32>} : memref<8x16x32xf32, #tpu.memory_space<vmem>>, vector<1x16x32xf32>,
    %c1_i32 = arith.constant 1 : i32
    %c0_33 = arith.constant 0 : index
    %c0_34 = arith.constant 0 : index
    %53 = vector.load %arg8[%c0_33, %c0_34] : memref<16x32xf32, #tpu.memory_space<vmem>>, vector<16x32xf32>
    %c0_35 = arith.constant 0 : index
    %c0_36 = arith.constant 0 : index
    %54 = vector.load %arg9[%c0_35, %c0_36] : memref<16x32xf32, #tpu.memory_space<vmem>>, vector<16x32xf32>
    %55 = arith.index_cast %c1_i32 : i32 to index
    %c0_37 = arith.constant 0 : index
    %c0_38 = arith.constant 0 : index
    %56 = vector.load %arg10[%55, %c0_37, %c0_38] : memref<8x16x128xf32, #tpu.memory_space<vmem>>, vector<1x16x128xf32>
    %57 = vector.shape_cast %56 : vector<1x16x128xf32> to vector<16x128xf32>
    %58 = arith.truncf %53 : vector<16x32xf32> to vector<16x32xbf16>
    %c0_39 = arith.constant 0 : index
    %c0_40 = arith.constant 0 : index
    %59 = vector.load %arg3[%c0_39, %c0_40] : memref<32x128xbf16, #tpu.memory_space<vmem>>, vector<32x128xbf16>
    %cst_41 = arith.constant dense<0.000000e+00> : vector<16x128xf32>
    %60 = tpu.matmul %58, %59, %cst_41 {dimension_numbers = #tpu.dot_dimension_numbers<[1], [0], [0], [1], [0, 0, 1, 1], [], []>} : vector<16x32xbf16>, vector<32x128xbf16>, vector<16x128xf32> -> vector<16x128xf32>
    %61 = arith.addf %57, %60 : vector<16x128xf32>
    %62 = vector.extract_strided_slice %61 {offsets = [0, 0], sizes = [16, 32], strides = [1, 1]} : vector<16x128xf32> to vector<16x32xf32>
    %63 = arith.negf %62 : vector<16x32xf32>
    %64 = math.exp %63 : vector<16x32xf32>
    %cst_42 = arith.constant 1.000000e+00 : f32
    %65 = vector.broadcast %cst_42 : f32 to vector<16x32xf32>
    %66 = arith.addf %65, %64 : vector<16x32xf32>
    %67 = arith.divf %65, %66 : vector<16x32xf32>
    %68 = vector.extract_strided_slice %61 {offsets = [0, 32], sizes = [16, 32], strides = [1, 1]} : vector<16x128xf32> to vector<16x32xf32>
    %69 = arith.negf %68 : vector<16x32xf32>
    %70 = math.exp %69 : vector<16x32xf32>
    %cst_43 = arith.constant 1.000000e+00 : f32
    %71 = vector.broadcast %cst_43 : f32 to vector<16x32xf32>
    %72 = arith.addf %71, %70 : vector<16x32xf32>
    %73 = arith.divf %71, %72 : vector<16x32xf32>
    %74 = vector.extract_strided_slice %61 {offsets = [0, 64], sizes = [16, 32], strides = [1, 1]} : vector<16x128xf32> to vector<16x32xf32>
    %75 = math.tanh %74 : vector<16x32xf32>
    %76 = vector.extract_strided_slice %61 {offsets = [0, 96], sizes = [16, 32], strides = [1, 1]} : vector<16x128xf32> to vector<16x32xf32>
    %77 = arith.negf %76 : vector<16x32xf32>
    %78 = math.exp %77 : vector<16x32xf32>
    %cst_44 = arith.constant 1.000000e+00 : f32
    %79 = vector.broadcast %cst_44 : f32 to vector<16x32xf32>
    %80 = arith.addf %79, %78 : vector<16x32xf32>
    %81 = arith.divf %79, %80 : vector<16x32xf32>
    %82 = arith.mulf %73, %54 : vector<16x32xf32>
    %83 = arith.mulf %67, %75 : vector<16x32xf32>
    %84 = arith.addf %82, %83 : vector<16x32xf32>
    %85 = math.tanh %84 : vector<16x32xf32>
    %86 = arith.mulf %81, %85 : vector<16x32xf32>
    %c0_45 = arith.constant 0 : index
    %c0_46 = arith.constant 0 : index
    %87 = vector.load %arg8[%c0_45, %c0_46] : memref<16x32xf32, #tpu.memory_space<vmem>>, vector<16x32xf32>
    tpu.vector_store %arg8[%c0_45, %c0_46], %86 {strides = array<i32>} : memref<16x32xf32, #tpu.memory_space<vmem>>, vector<16x32xf32>,
    %c0_47 = arith.constant 0 : index
    %c0_48 = arith.constant 0 : index
    %88 = vector.load %arg9[%c0_47, %c0_48] : memref<16x32xf32, #tpu.memory_space<vmem>>, vector<16x32xf32>
    tpu.vector_store %arg9[%c0_47, %c0_48], %84 {strides = array<i32>} : memref<16x32xf32, #tpu.memory_space<vmem>>, vector<16x32xf32>,
    %89 = arith.index_cast %c1_i32 : i32 to index
    %c0_49 = arith.constant 0 : index
    %c0_50 = arith.constant 0 : index
    %90 = vector.load %arg11[%89, %c0_49, %c0_50] : memref<8x16x32xf32, #tpu.memory_space<vmem>>, vector<1x16x32xf32>
    %91 = vector.shape_cast %90 : vector<1x16x32xf32> to vector<16x32xf32>
    %92 = vector.shape_cast %86 : vector<16x32xf32> to vector<1x16x32xf32>
    tpu.vector_store %arg11[%89, %c0_49, %c0_50], %92 {strides = array<i32>} : memref<8x16x32xf32, #tpu.memory_space<vmem>>, vector<1x16x32xf32>,
    %c2_i32 = arith.constant 2 : i32
    %c0_51 = arith.constant 0 : index
    %c0_52 = arith.constant 0 : index
    %93 = vector.load %arg8[%c0_51, %c0_52] : memref<16x32xf32, #tpu.memory_space<vmem>>, vector<16x32xf32>
    %c0_53 = arith.constant 0 : index
    %c0_54 = arith.constant 0 : index
    %94 = vector.load %arg9[%c0_53, %c0_54] : memref<16x32xf32, #tpu.memory_space<vmem>>, vector<16x32xf32>
    %95 = arith.index_cast %c2_i32 : i32 to index
    %c0_55 = arith.constant 0 : index
    %c0_56 = arith.constant 0 : index
    %96 = vector.load %arg10[%95, %c0_55, %c0_56] : memref<8x16x128xf32, #tpu.memory_space<vmem>>, vector<1x16x128xf32>
    %97 = vector.shape_cast %96 : vector<1x16x128xf32> to vector<16x128xf32>
    %98 = arith.truncf %93 : vector<16x32xf32> to vector<16x32xbf16>
    %c0_57 = arith.constant 0 : index
    %c0_58 = arith.constant 0 : index
    %99 = vector.load %arg3[%c0_57, %c0_58] : memref<32x128xbf16, #tpu.memory_space<vmem>>, vector<32x128xbf16>
    %cst_59 = arith.constant dense<0.000000e+00> : vector<16x128xf32>
    %100 = tpu.matmul %98, %99, %cst_59 {dimension_numbers = #tpu.dot_dimension_numbers<[1], [0], [0], [1], [0, 0, 1, 1], [], []>} : vector<16x32xbf16>, vector<32x128xbf16>, vector<16x128xf32> -> vector<16x128xf32>
    %101 = arith.addf %97, %100 : vector<16x128xf32>
    %102 = vector.extract_strided_slice %101 {offsets = [0, 0], sizes = [16, 32], strides = [1, 1]} : vector<16x128xf32> to vector<16x32xf32>
    %103 = arith.negf %102 : vector<16x32xf32>
    %104 = math.exp %103 : vector<16x32xf32>
    %cst_60 = arith.constant 1.000000e+00 : f32
    %105 = vector.broadcast %cst_60 : f32 to vector<16x32xf32>
    %106 = arith.addf %105, %104 : vector<16x32xf32>
    %107 = arith.divf %105, %106 : vector<16x32xf32>
    %108 = vector.extract_strided_slice %101 {offsets = [0, 32], sizes = [16, 32], strides = [1, 1]} : vector<16x128xf32> to vector<16x32xf32>
    %109 = arith.negf %108 : vector<16x32xf32>
    %110 = math.exp %109 : vector<16x32xf32>
    %cst_61 = arith.constant 1.000000e+00 : f32
    %111 = vector.broadcast %cst_61 : f32 to vector<16x32xf32>
    %112 = arith.addf %111, %110 : vector<16x32xf32>
    %113 = arith.divf %111, %112 : vector<16x32xf32>
    %114 = vector.extract_strided_slice %101 {offsets = [0, 64], sizes = [16, 32], strides = [1, 1]} : vector<16x128xf32> to vector<16x32xf32>
    %115 = math.tanh %114 : vector<16x32xf32>
    %116 = vector.extract_strided_slice %101 {offsets = [0, 96], sizes = [16, 32], strides = [1, 1]} : vector<16x128xf32> to vector<16x32xf32>
    %117 = arith.negf %116 : vector<16x32xf32>
    %118 = math.exp %117 : vector<16x32xf32>
    %cst_62 = arith.constant 1.000000e+00 : f32
    %119 = vector.broadcast %cst_62 : f32 to vector<16x32xf32>
    %120 = arith.addf %119, %118 : vector<16x32xf32>
    %121 = arith.divf %119, %120 : vector<16x32xf32>
    %122 = arith.mulf %113, %94 : vector<16x32xf32>
    %123 = arith.mulf %107, %115 : vector<16x32xf32>
    %124 = arith.addf %122, %123 : vector<16x32xf32>
    %125 = math.tanh %124 : vector<16x32xf32>
    %126 = arith.mulf %121, %125 : vector<16x32xf32>
    %c0_63 = arith.constant 0 : index
    %c0_64 = arith.constant 0 : index
    %127 = vector.load %arg8[%c0_63, %c0_64] : memref<16x32xf32, #tpu.memory_space<vmem>>, vector<16x32xf32>
    tpu.vector_store %arg8[%c0_63, %c0_64], %126 {strides = array<i32>} : memref<16x32xf32, #tpu.memory_space<vmem>>, vector<16x32xf32>,
    %c0_65 = arith.constant 0 : index
    %c0_66 = arith.constant 0 : index
    %128 = vector.load %arg9[%c0_65, %c0_66] : memref<16x32xf32, #tpu.memory_space<vmem>>, vector<16x32xf32>
    tpu.vector_store %arg9[%c0_65, %c0_66], %124 {strides = array<i32>} : memref<16x32xf32, #tpu.memory_space<vmem>>, vector<16x32xf32>,
    %129 = arith.index_cast %c2_i32 : i32 to index
    %c0_67 = arith.constant 0 : index
    %c0_68 = arith.constant 0 : index
    %130 = vector.load %arg11[%129, %c0_67, %c0_68] : memref<8x16x32xf32, #tpu.memory_space<vmem>>, vector<1x16x32xf32>
    %131 = vector.shape_cast %130 : vector<1x16x32xf32> to vector<16x32xf32>
    %132 = vector.shape_cast %126 : vector<16x32xf32> to vector<1x16x32xf32>
    tpu.vector_store %arg11[%129, %c0_67, %c0_68], %132 {strides = array<i32>} : memref<8x16x32xf32, #tpu.memory_space<vmem>>, vector<1x16x32xf32>,
    %c3_i32 = arith.constant 3 : i32
    %c0_69 = arith.constant 0 : index
    %c0_70 = arith.constant 0 : index
    %133 = vector.load %arg8[%c0_69, %c0_70] : memref<16x32xf32, #tpu.memory_space<vmem>>, vector<16x32xf32>
    %c0_71 = arith.constant 0 : index
    %c0_72 = arith.constant 0 : index
    %134 = vector.load %arg9[%c0_71, %c0_72] : memref<16x32xf32, #tpu.memory_space<vmem>>, vector<16x32xf32>
    %135 = arith.index_cast %c3_i32 : i32 to index
    %c0_73 = arith.constant 0 : index
    %c0_74 = arith.constant 0 : index
    %136 = vector.load %arg10[%135, %c0_73, %c0_74] : memref<8x16x128xf32, #tpu.memory_space<vmem>>, vector<1x16x128xf32>
    %137 = vector.shape_cast %136 : vector<1x16x128xf32> to vector<16x128xf32>
    %138 = arith.truncf %133 : vector<16x32xf32> to vector<16x32xbf16>
    %c0_75 = arith.constant 0 : index
    %c0_76 = arith.constant 0 : index
    %139 = vector.load %arg3[%c0_75, %c0_76] : memref<32x128xbf16, #tpu.memory_space<vmem>>, vector<32x128xbf16>
    %cst_77 = arith.constant dense<0.000000e+00> : vector<16x128xf32>
    %140 = tpu.matmul %138, %139, %cst_77 {dimension_numbers = #tpu.dot_dimension_numbers<[1], [0], [0], [1], [0, 0, 1, 1], [], []>} : vector<16x32xbf16>, vector<32x128xbf16>, vector<16x128xf32> -> vector<16x128xf32>
    %141 = arith.addf %137, %140 : vector<16x128xf32>
    %142 = vector.extract_strided_slice %141 {offsets = [0, 0], sizes = [16, 32], strides = [1, 1]} : vector<16x128xf32> to vector<16x32xf32>
    %143 = arith.negf %142 : vector<16x32xf32>
    %144 = math.exp %143 : vector<16x32xf32>
    %cst_78 = arith.constant 1.000000e+00 : f32
    %145 = vector.broadcast %cst_78 : f32 to vector<16x32xf32>
    %146 = arith.addf %145, %144 : vector<16x32xf32>
    %147 = arith.divf %145, %146 : vector<16x32xf32>
    %148 = vector.extract_strided_slice %141 {offsets = [0, 32], sizes = [16, 32], strides = [1, 1]} : vector<16x128xf32> to vector<16x32xf32>
    %149 = arith.negf %148 : vector<16x32xf32>
    %150 = math.exp %149 : vector<16x32xf32>
    %cst_79 = arith.constant 1.000000e+00 : f32
    %151 = vector.broadcast %cst_79 : f32 to vector<16x32xf32>
    %152 = arith.addf %151, %150 : vector<16x32xf32>
    %153 = arith.divf %151, %152 : vector<16x32xf32>
    %154 = vector.extract_strided_slice %141 {offsets = [0, 64], sizes = [16, 32], strides = [1, 1]} : vector<16x128xf32> to vector<16x32xf32>
    %155 = math.tanh %154 : vector<16x32xf32>
    %156 = vector.extract_strided_slice %141 {offsets = [0, 96], sizes = [16, 32], strides = [1, 1]} : vector<16x128xf32> to vector<16x32xf32>
    %157 = arith.negf %156 : vector<16x32xf32>
    %158 = math.exp %157 : vector<16x32xf32>
    %cst_80 = arith.constant 1.000000e+00 : f32
    %159 = vector.broadcast %cst_80 : f32 to vector<16x32xf32>
    %160 = arith.addf %159, %158 : vector<16x32xf32>
    %161 = arith.divf %159, %160 : vector<16x32xf32>
    %162 = arith.mulf %153, %134 : vector<16x32xf32>
    %163 = arith.mulf %147, %155 : vector<16x32xf32>
    %164 = arith.addf %162, %163 : vector<16x32xf32>
    %165 = math.tanh %164 : vector<16x32xf32>
    %166 = arith.mulf %161, %165 : vector<16x32xf32>
    %c0_81 = arith.constant 0 : index
    %c0_82 = arith.constant 0 : index
    %167 = vector.load %arg8[%c0_81, %c0_82] : memref<16x32xf32, #tpu.memory_space<vmem>>, vector<16x32xf32>
    tpu.vector_store %arg8[%c0_81, %c0_82], %166 {strides = array<i32>} : memref<16x32xf32, #tpu.memory_space<vmem>>, vector<16x32xf32>,
    %c0_83 = arith.constant 0 : index
    %c0_84 = arith.constant 0 : index
    %168 = vector.load %arg9[%c0_83, %c0_84] : memref<16x32xf32, #tpu.memory_space<vmem>>, vector<16x32xf32>
    tpu.vector_store %arg9[%c0_83, %c0_84], %164 {strides = array<i32>} : memref<16x32xf32, #tpu.memory_space<vmem>>, vector<16x32xf32>,
    %169 = arith.index_cast %c3_i32 : i32 to index
    %c0_85 = arith.constant 0 : index
    %c0_86 = arith.constant 0 : index
    %170 = vector.load %arg11[%169, %c0_85, %c0_86] : memref<8x16x32xf32, #tpu.memory_space<vmem>>, vector<1x16x32xf32>
    %171 = vector.shape_cast %170 : vector<1x16x32xf32> to vector<16x32xf32>
    %172 = vector.shape_cast %166 : vector<16x32xf32> to vector<1x16x32xf32>
    tpu.vector_store %arg11[%169, %c0_85, %c0_86], %172 {strides = array<i32>} : memref<8x16x32xf32, #tpu.memory_space<vmem>>, vector<1x16x32xf32>,
    %c4_i32 = arith.constant 4 : i32
    %c0_87 = arith.constant 0 : index
    %c0_88 = arith.constant 0 : index
    %173 = vector.load %arg8[%c0_87, %c0_88] : memref<16x32xf32, #tpu.memory_space<vmem>>, vector<16x32xf32>
    %c0_89 = arith.constant 0 : index
    %c0_90 = arith.constant 0 : index
    %174 = vector.load %arg9[%c0_89, %c0_90] : memref<16x32xf32, #tpu.memory_space<vmem>>, vector<16x32xf32>
    %175 = arith.index_cast %c4_i32 : i32 to index
    %c0_91 = arith.constant 0 : index
    %c0_92 = arith.constant 0 : index
    %176 = vector.load %arg10[%175, %c0_91, %c0_92] : memref<8x16x128xf32, #tpu.memory_space<vmem>>, vector<1x16x128xf32>
    %177 = vector.shape_cast %176 : vector<1x16x128xf32> to vector<16x128xf32>
    %178 = arith.truncf %173 : vector<16x32xf32> to vector<16x32xbf16>
    %c0_93 = arith.constant 0 : index
    %c0_94 = arith.constant 0 : index
    %179 = vector.load %arg3[%c0_93, %c0_94] : memref<32x128xbf16, #tpu.memory_space<vmem>>, vector<32x128xbf16>
    %cst_95 = arith.constant dense<0.000000e+00> : vector<16x128xf32>
    %180 = tpu.matmul %178, %179, %cst_95 {dimension_numbers = #tpu.dot_dimension_numbers<[1], [0], [0], [1], [0, 0, 1, 1], [], []>} : vector<16x32xbf16>, vector<32x128xbf16>, vector<16x128xf32> -> vector<16x128xf32>
    %181 = arith.addf %177, %180 : vector<16x128xf32>
    %182 = vector.extract_strided_slice %181 {offsets = [0, 0], sizes = [16, 32], strides = [1, 1]} : vector<16x128xf32> to vector<16x32xf32>
    %183 = arith.negf %182 : vector<16x32xf32>
    %184 = math.exp %183 : vector<16x32xf32>
    %cst_96 = arith.constant 1.000000e+00 : f32
    %185 = vector.broadcast %cst_96 : f32 to vector<16x32xf32>
    %186 = arith.addf %185, %184 : vector<16x32xf32>
    %187 = arith.divf %185, %186 : vector<16x32xf32>
    %188 = vector.extract_strided_slice %181 {offsets = [0, 32], sizes = [16, 32], strides = [1, 1]} : vector<16x128xf32> to vector<16x32xf32>
    %189 = arith.negf %188 : vector<16x32xf32>
    %190 = math.exp %189 : vector<16x32xf32>
    %cst_97 = arith.constant 1.000000e+00 : f32
    %191 = vector.broadcast %cst_97 : f32 to vector<16x32xf32>
    %192 = arith.addf %191, %190 : vector<16x32xf32>
    %193 = arith.divf %191, %192 : vector<16x32xf32>
    %194 = vector.extract_strided_slice %181 {offsets = [0, 64], sizes = [16, 32], strides = [1, 1]} : vector<16x128xf32> to vector<16x32xf32>
    %195 = math.tanh %194 : vector<16x32xf32>
    %196 = vector.extract_strided_slice %181 {offsets = [0, 96], sizes = [16, 32], strides = [1, 1]} : vector<16x128xf32> to vector<16x32xf32>
    %197 = arith.negf %196 : vector<16x32xf32>
    %198 = math.exp %197 : vector<16x32xf32>
    %cst_98 = arith.constant 1.000000e+00 : f32
    %199 = vector.broadcast %cst_98 : f32 to vector<16x32xf32>
    %200 = arith.addf %199, %198 : vector<16x32xf32>
    %201 = arith.divf %199, %200 : vector<16x32xf32>
    %202 = arith.mulf %193, %174 : vector<16x32xf32>
    %203 = arith.mulf %187, %195 : vector<16x32xf32>
    %204 = arith.addf %202, %203 : vector<16x32xf32>
    %205 = math.tanh %204 : vector<16x32xf32>
    %206 = arith.mulf %201, %205 : vector<16x32xf32>
    %c0_99 = arith.constant 0 : index
    %c0_100 = arith.constant 0 : index
    %207 = vector.load %arg8[%c0_99, %c0_100] : memref<16x32xf32, #tpu.memory_space<vmem>>, vector<16x32xf32>
    tpu.vector_store %arg8[%c0_99, %c0_100], %206 {strides = array<i32>} : memref<16x32xf32, #tpu.memory_space<vmem>>, vector<16x32xf32>,
    %c0_101 = arith.constant 0 : index
    %c0_102 = arith.constant 0 : index
    %208 = vector.load %arg9[%c0_101, %c0_102] : memref<16x32xf32, #tpu.memory_space<vmem>>, vector<16x32xf32>
    tpu.vector_store %arg9[%c0_101, %c0_102], %204 {strides = array<i32>} : memref<16x32xf32, #tpu.memory_space<vmem>>, vector<16x32xf32>,
    %209 = arith.index_cast %c4_i32 : i32 to index
    %c0_103 = arith.constant 0 : index
    %c0_104 = arith.constant 0 : index
    %210 = vector.load %arg11[%209, %c0_103, %c0_104] : memref<8x16x32xf32, #tpu.memory_space<vmem>>, vector<1x16x32xf32>
    %211 = vector.shape_cast %210 : vector<1x16x32xf32> to vector<16x32xf32>
    %212 = vector.shape_cast %206 : vector<16x32xf32> to vector<1x16x32xf32>
    tpu.vector_store %arg11[%209, %c0_103, %c0_104], %212 {strides = array<i32>} : memref<8x16x32xf32, #tpu.memory_space<vmem>>, vector<1x16x32xf32>,
    %c5_i32 = arith.constant 5 : i32
    %c0_105 = arith.constant 0 : index
    %c0_106 = arith.constant 0 : index
    %213 = vector.load %arg8[%c0_105, %c0_106] : memref<16x32xf32, #tpu.memory_space<vmem>>, vector<16x32xf32>
    %c0_107 = arith.constant 0 : index
    %c0_108 = arith.constant 0 : index
    %214 = vector.load %arg9[%c0_107, %c0_108] : memref<16x32xf32, #tpu.memory_space<vmem>>, vector<16x32xf32>
    %215 = arith.index_cast %c5_i32 : i32 to index
    %c0_109 = arith.constant 0 : index
    %c0_110 = arith.constant 0 : index
    %216 = vector.load %arg10[%215, %c0_109, %c0_110] : memref<8x16x128xf32, #tpu.memory_space<vmem>>, vector<1x16x128xf32>
    %217 = vector.shape_cast %216 : vector<1x16x128xf32> to vector<16x128xf32>
    %218 = arith.truncf %213 : vector<16x32xf32> to vector<16x32xbf16>
    %c0_111 = arith.constant 0 : index
    %c0_112 = arith.constant 0 : index
    %219 = vector.load %arg3[%c0_111, %c0_112] : memref<32x128xbf16, #tpu.memory_space<vmem>>, vector<32x128xbf16>
    %cst_113 = arith.constant dense<0.000000e+00> : vector<16x128xf32>
    %220 = tpu.matmul %218, %219, %cst_113 {dimension_numbers = #tpu.dot_dimension_numbers<[1], [0], [0], [1], [0, 0, 1, 1], [], []>} : vector<16x32xbf16>, vector<32x128xbf16>, vector<16x128xf32> -> vector<16x128xf32>
    %221 = arith.addf %217, %220 : vector<16x128xf32>
    %222 = vector.extract_strided_slice %221 {offsets = [0, 0], sizes = [16, 32], strides = [1, 1]} : vector<16x128xf32> to vector<16x32xf32>
    %223 = arith.negf %222 : vector<16x32xf32>
    %224 = math.exp %223 : vector<16x32xf32>
    %cst_114 = arith.constant 1.000000e+00 : f32
    %225 = vector.broadcast %cst_114 : f32 to vector<16x32xf32>
    %226 = arith.addf %225, %224 : vector<16x32xf32>
    %227 = arith.divf %225, %226 : vector<16x32xf32>
    %228 = vector.extract_strided_slice %221 {offsets = [0, 32], sizes = [16, 32], strides = [1, 1]} : vector<16x128xf32> to vector<16x32xf32>
    %229 = arith.negf %228 : vector<16x32xf32>
    %230 = math.exp %229 : vector<16x32xf32>
    %cst_115 = arith.constant 1.000000e+00 : f32
    %231 = vector.broadcast %cst_115 : f32 to vector<16x32xf32>
    %232 = arith.addf %231, %230 : vector<16x32xf32>
    %233 = arith.divf %231, %232 : vector<16x32xf32>
    %234 = vector.extract_strided_slice %221 {offsets = [0, 64], sizes = [16, 32], strides = [1, 1]} : vector<16x128xf32> to vector<16x32xf32>
    %235 = math.tanh %234 : vector<16x32xf32>
    %236 = vector.extract_strided_slice %221 {offsets = [0, 96], sizes = [16, 32], strides = [1, 1]} : vector<16x128xf32> to vector<16x32xf32>
    %237 = arith.negf %236 : vector<16x32xf32>
    %238 = math.exp %237 : vector<16x32xf32>
    %cst_116 = arith.constant 1.000000e+00 : f32
    %239 = vector.broadcast %cst_116 : f32 to vector<16x32xf32>
    %240 = arith.addf %239, %238 : vector<16x32xf32>
    %241 = arith.divf %239, %240 : vector<16x32xf32>
    %242 = arith.mulf %233, %214 : vector<16x32xf32>
    %243 = arith.mulf %227, %235 : vector<16x32xf32>
    %244 = arith.addf %242, %243 : vector<16x32xf32>
    %245 = math.tanh %244 : vector<16x32xf32>
    %246 = arith.mulf %241, %245 : vector<16x32xf32>
    %c0_117 = arith.constant 0 : index
    %c0_118 = arith.constant 0 : index
    %247 = vector.load %arg8[%c0_117, %c0_118] : memref<16x32xf32, #tpu.memory_space<vmem>>, vector<16x32xf32>
    tpu.vector_store %arg8[%c0_117, %c0_118], %246 {strides = array<i32>} : memref<16x32xf32, #tpu.memory_space<vmem>>, vector<16x32xf32>,
    %c0_119 = arith.constant 0 : index
    %c0_120 = arith.constant 0 : index
    %248 = vector.load %arg9[%c0_119, %c0_120] : memref<16x32xf32, #tpu.memory_space<vmem>>, vector<16x32xf32>
    tpu.vector_store %arg9[%c0_119, %c0_120], %244 {strides = array<i32>} : memref<16x32xf32, #tpu.memory_space<vmem>>, vector<16x32xf32>,
    %249 = arith.index_cast %c5_i32 : i32 to index
    %c0_121 = arith.constant 0 : index
    %c0_122 = arith.constant 0 : index
    %250 = vector.load %arg11[%249, %c0_121, %c0_122] : memref<8x16x32xf32, #tpu.memory_space<vmem>>, vector<1x16x32xf32>
    %251 = vector.shape_cast %250 : vector<1x16x32xf32> to vector<16x32xf32>
    %252 = vector.shape_cast %246 : vector<16x32xf32> to vector<1x16x32xf32>
    tpu.vector_store %arg11[%249, %c0_121, %c0_122], %252 {strides = array<i32>} : memref<8x16x32xf32, #tpu.memory_space<vmem>>, vector<1x16x32xf32>,
    %c6_i32 = arith.constant 6 : i32
    %c0_123 = arith.constant 0 : index
    %c0_124 = arith.constant 0 : index
    %253 = vector.load %arg8[%c0_123, %c0_124] : memref<16x32xf32, #tpu.memory_space<vmem>>, vector<16x32xf32>
    %c0_125 = arith.constant 0 : index
    %c0_126 = arith.constant 0 : index
    %254 = vector.load %arg9[%c0_125, %c0_126] : memref<16x32xf32, #tpu.memory_space<vmem>>, vector<16x32xf32>
    %255 = arith.index_cast %c6_i32 : i32 to index
    %c0_127 = arith.constant 0 : index
    %c0_128 = arith.constant 0 : index
    %256 = vector.load %arg10[%255, %c0_127, %c0_128] : memref<8x16x128xf32, #tpu.memory_space<vmem>>, vector<1x16x128xf32>
    %257 = vector.shape_cast %256 : vector<1x16x128xf32> to vector<16x128xf32>
    %258 = arith.truncf %253 : vector<16x32xf32> to vector<16x32xbf16>
    %c0_129 = arith.constant 0 : index
    %c0_130 = arith.constant 0 : index
    %259 = vector.load %arg3[%c0_129, %c0_130] : memref<32x128xbf16, #tpu.memory_space<vmem>>, vector<32x128xbf16>
    %cst_131 = arith.constant dense<0.000000e+00> : vector<16x128xf32>
    %260 = tpu.matmul %258, %259, %cst_131 {dimension_numbers = #tpu.dot_dimension_numbers<[1], [0], [0], [1], [0, 0, 1, 1], [], []>} : vector<16x32xbf16>, vector<32x128xbf16>, vector<16x128xf32> -> vector<16x128xf32>
    %261 = arith.addf %257, %260 : vector<16x128xf32>
    %262 = vector.extract_strided_slice %261 {offsets = [0, 0], sizes = [16, 32], strides = [1, 1]} : vector<16x128xf32> to vector<16x32xf32>
    %263 = arith.negf %262 : vector<16x32xf32>
    %264 = math.exp %263 : vector<16x32xf32>
    %cst_132 = arith.constant 1.000000e+00 : f32
    %265 = vector.broadcast %cst_132 : f32 to vector<16x32xf32>
    %266 = arith.addf %265, %264 : vector<16x32xf32>
    %267 = arith.divf %265, %266 : vector<16x32xf32>
    %268 = vector.extract_strided_slice %261 {offsets = [0, 32], sizes = [16, 32], strides = [1, 1]} : vector<16x128xf32> to vector<16x32xf32>
    %269 = arith.negf %268 : vector<16x32xf32>
    %270 = math.exp %269 : vector<16x32xf32>
    %cst_133 = arith.constant 1.000000e+00 : f32
    %271 = vector.broadcast %cst_133 : f32 to vector<16x32xf32>
    %272 = arith.addf %271, %270 : vector<16x32xf32>
    %273 = arith.divf %271, %272 : vector<16x32xf32>
    %274 = vector.extract_strided_slice %261 {offsets = [0, 64], sizes = [16, 32], strides = [1, 1]} : vector<16x128xf32> to vector<16x32xf32>
    %275 = math.tanh %274 : vector<16x32xf32>
    %276 = vector.extract_strided_slice %261 {offsets = [0, 96], sizes = [16, 32], strides = [1, 1]} : vector<16x128xf32> to vector<16x32xf32>
    %277 = arith.negf %276 : vector<16x32xf32>
    %278 = math.exp %277 : vector<16x32xf32>
    %cst_134 = arith.constant 1.000000e+00 : f32
    %279 = vector.broadcast %cst_134 : f32 to vector<16x32xf32>
    %280 = arith.addf %279, %278 : vector<16x32xf32>
    %281 = arith.divf %279, %280 : vector<16x32xf32>
    %282 = arith.mulf %273, %254 : vector<16x32xf32>
    %283 = arith.mulf %267, %275 : vector<16x32xf32>
    %284 = arith.addf %282, %283 : vector<16x32xf32>
    %285 = math.tanh %284 : vector<16x32xf32>
    %286 = arith.mulf %281, %285 : vector<16x32xf32>
    %c0_135 = arith.constant 0 : index
    %c0_136 = arith.constant 0 : index
    %287 = vector.load %arg8[%c0_135, %c0_136] : memref<16x32xf32, #tpu.memory_space<vmem>>, vector<16x32xf32>
    tpu.vector_store %arg8[%c0_135, %c0_136], %286 {strides = array<i32>} : memref<16x32xf32, #tpu.memory_space<vmem>>, vector<16x32xf32>,
    %c0_137 = arith.constant 0 : index
    %c0_138 = arith.constant 0 : index
    %288 = vector.load %arg9[%c0_137, %c0_138] : memref<16x32xf32, #tpu.memory_space<vmem>>, vector<16x32xf32>
    tpu.vector_store %arg9[%c0_137, %c0_138], %284 {strides = array<i32>} : memref<16x32xf32, #tpu.memory_space<vmem>>, vector<16x32xf32>,
    %289 = arith.index_cast %c6_i32 : i32 to index
    %c0_139 = arith.constant 0 : index
    %c0_140 = arith.constant 0 : index
    %290 = vector.load %arg11[%289, %c0_139, %c0_140] : memref<8x16x32xf32, #tpu.memory_space<vmem>>, vector<1x16x32xf32>
    %291 = vector.shape_cast %290 : vector<1x16x32xf32> to vector<16x32xf32>
    %292 = vector.shape_cast %286 : vector<16x32xf32> to vector<1x16x32xf32>
    tpu.vector_store %arg11[%289, %c0_139, %c0_140], %292 {strides = array<i32>} : memref<8x16x32xf32, #tpu.memory_space<vmem>>, vector<1x16x32xf32>,
    %c7_i32 = arith.constant 7 : i32
    %c0_141 = arith.constant 0 : index
    %c0_142 = arith.constant 0 : index
    %293 = vector.load %arg8[%c0_141, %c0_142] : memref<16x32xf32, #tpu.memory_space<vmem>>, vector<16x32xf32>
    %c0_143 = arith.constant 0 : index
    %c0_144 = arith.constant 0 : index
    %294 = vector.load %arg9[%c0_143, %c0_144] : memref<16x32xf32, #tpu.memory_space<vmem>>, vector<16x32xf32>
    %295 = arith.index_cast %c7_i32 : i32 to index
    %c0_145 = arith.constant 0 : index
    %c0_146 = arith.constant 0 : index
    %296 = vector.load %arg10[%295, %c0_145, %c0_146] : memref<8x16x128xf32, #tpu.memory_space<vmem>>, vector<1x16x128xf32>
    %297 = vector.shape_cast %296 : vector<1x16x128xf32> to vector<16x128xf32>
    %298 = arith.truncf %293 : vector<16x32xf32> to vector<16x32xbf16>
    %c0_147 = arith.constant 0 : index
    %c0_148 = arith.constant 0 : index
    %299 = vector.load %arg3[%c0_147, %c0_148] : memref<32x128xbf16, #tpu.memory_space<vmem>>, vector<32x128xbf16>
    %cst_149 = arith.constant dense<0.000000e+00> : vector<16x128xf32>
    %300 = tpu.matmul %298, %299, %cst_149 {dimension_numbers = #tpu.dot_dimension_numbers<[1], [0], [0], [1], [0, 0, 1, 1], [], []>} : vector<16x32xbf16>, vector<32x128xbf16>, vector<16x128xf32> -> vector<16x128xf32>
    %301 = arith.addf %297, %300 : vector<16x128xf32>
    %302 = vector.extract_strided_slice %301 {offsets = [0, 0], sizes = [16, 32], strides = [1, 1]} : vector<16x128xf32> to vector<16x32xf32>
    %303 = arith.negf %302 : vector<16x32xf32>
    %304 = math.exp %303 : vector<16x32xf32>
    %cst_150 = arith.constant 1.000000e+00 : f32
    %305 = vector.broadcast %cst_150 : f32 to vector<16x32xf32>
    %306 = arith.addf %305, %304 : vector<16x32xf32>
    %307 = arith.divf %305, %306 : vector<16x32xf32>
    %308 = vector.extract_strided_slice %301 {offsets = [0, 32], sizes = [16, 32], strides = [1, 1]} : vector<16x128xf32> to vector<16x32xf32>
    %309 = arith.negf %308 : vector<16x32xf32>
    %310 = math.exp %309 : vector<16x32xf32>
    %cst_151 = arith.constant 1.000000e+00 : f32
    %311 = vector.broadcast %cst_151 : f32 to vector<16x32xf32>
    %312 = arith.addf %311, %310 : vector<16x32xf32>
    %313 = arith.divf %311, %312 : vector<16x32xf32>
    %314 = vector.extract_strided_slice %301 {offsets = [0, 64], sizes = [16, 32], strides = [1, 1]} : vector<16x128xf32> to vector<16x32xf32>
    %315 = math.tanh %314 : vector<16x32xf32>
    %316 = vector.extract_strided_slice %301 {offsets = [0, 96], sizes = [16, 32], strides = [1, 1]} : vector<16x128xf32> to vector<16x32xf32>
    %317 = arith.negf %316 : vector<16x32xf32>
    %318 = math.exp %317 : vector<16x32xf32>
    %cst_152 = arith.constant 1.000000e+00 : f32
    %319 = vector.broadcast %cst_152 : f32 to vector<16x32xf32>
    %320 = arith.addf %319, %318 : vector<16x32xf32>
    %321 = arith.divf %319, %320 : vector<16x32xf32>
    %322 = arith.mulf %313, %294 : vector<16x32xf32>
    %323 = arith.mulf %307, %315 : vector<16x32xf32>
    %324 = arith.addf %322, %323 : vector<16x32xf32>
    %325 = math.tanh %324 : vector<16x32xf32>
    %326 = arith.mulf %321, %325 : vector<16x32xf32>
    %c0_153 = arith.constant 0 : index
    %c0_154 = arith.constant 0 : index
    %327 = vector.load %arg8[%c0_153, %c0_154] : memref<16x32xf32, #tpu.memory_space<vmem>>, vector<16x32xf32>
    tpu.vector_store %arg8[%c0_153, %c0_154], %326 {strides = array<i32>} : memref<16x32xf32, #tpu.memory_space<vmem>>, vector<16x32xf32>,
    %c0_155 = arith.constant 0 : index
    %c0_156 = arith.constant 0 : index
    %328 = vector.load %arg9[%c0_155, %c0_156] : memref<16x32xf32, #tpu.memory_space<vmem>>, vector<16x32xf32>
    tpu.vector_store %arg9[%c0_155, %c0_156], %324 {strides = array<i32>} : memref<16x32xf32, #tpu.memory_space<vmem>>, vector<16x32xf32>,
    %329 = arith.index_cast %c7_i32 : i32 to index
    %c0_157 = arith.constant 0 : index
    %c0_158 = arith.constant 0 : index
    %330 = vector.load %arg11[%329, %c0_157, %c0_158] : memref<8x16x32xf32, #tpu.memory_space<vmem>>, vector<1x16x32xf32>
    %331 = vector.shape_cast %330 : vector<1x16x32xf32> to vector<16x32xf32>
    %332 = vector.shape_cast %326 : vector<16x32xf32> to vector<1x16x32xf32>
    tpu.vector_store %arg11[%329, %c0_157, %c0_158], %332 {strides = array<i32>} : memref<8x16x32xf32, #tpu.memory_space<vmem>>, vector<1x16x32xf32>,
    %c8_i32 = arith.constant 8 : i32
    %c0_159 = arith.constant 0 : index
    %c0_160 = arith.constant 0 : index
    %c0_161 = arith.constant 0 : index
    %333 = vector.load %arg11[%c0_159, %c0_160, %c0_161] : memref<8x16x32xf32, #tpu.memory_space<vmem>>, vector<8x16x32xf32>
    %334 = vector.shape_cast %333 : vector<8x16x32xf32> to vector<128x32xf32>
    %335 = arith.truncf %334 : vector<128x32xf32> to vector<128x32xbf16>
    %c0_162 = arith.constant 0 : index
    %c0_163 = arith.constant 0 : index
    %336 = vector.load %arg5[%c0_162, %c0_163] : memref<32x16xbf16, #tpu.memory_space<vmem>>, vector<32x16xbf16>
    %cst_164 = arith.constant dense<0.000000e+00> : vector<128x16xf32>
    %337 = tpu.matmul %335, %336, %cst_164 {dimension_numbers = #tpu.dot_dimension_numbers<[1], [0], [0], [1], [0, 0, 1, 1], [], []>} : vector<128x32xbf16>, vector<32x16xbf16>, vector<128x16xf32> -> vector<128x16xf32>
    %c0_165 = arith.constant 0 : index
    %c0_166 = arith.constant 0 : index
    %338 = vector.load %arg6[%c0_165, %c0_166] : memref<1x16xf32, #tpu.memory_space<vmem>>, vector<1x16xf32>
    %339 = vector.broadcast %338 : vector<1x16xf32> to vector<128x16xf32>
    %340 = arith.addf %337, %339 : vector<128x16xf32>
    %341 = vector.shape_cast %340 : vector<128x16xf32> to vector<8x16x16xf32>
    %c0_167 = arith.constant 0 : index
    %c0_168 = arith.constant 0 : index
    %c0_169 = arith.constant 0 : index
    %342 = vector.load %arg7[%c0_167, %c0_168, %c0_169] : memref<8x16x16xf32, #tpu.memory_space<vmem>>, vector<8x16x16xf32>
    tpu.vector_store %arg7[%c0_167, %c0_168, %c0_169], %341 {strides = array<i32>} : memref<8x16x16xf32, #tpu.memory_space<vmem>>, vector<8x16x16xf32>,
    return
  }
  func.func @transform_0(%arg0: i32) -> (i32, i32, i32) {
    %c0_i32 = arith.constant 0 : i32
    %c0_i32_0 = arith.constant 0 : i32
    %c0_i32_1 = arith.constant 0 : i32
    return %c0_i32, %arg0, %c0_i32_0 : i32, i32, i32
  }
  func.func @transform_1(%arg0: i32) -> (i32, i32) {
    %c0_i32 = arith.constant 0 : i32
    %c0_i32_0 = arith.constant 0 : i32
    %c0_i32_1 = arith.constant 0 : i32
    return %c0_i32, %c0_i32_0 : i32, i32
  }
  func.func @transform_2(%arg0: i32) -> (i32, i32) {
    %c0_i32 = arith.constant 0 : i32
    %c0_i32_0 = arith.constant 0 : i32
    %c0_i32_1 = arith.constant 0 : i32
    return %c0_i32, %c0_i32_0 : i32, i32
  }
  func.func @transform_3(%arg0: i32) -> (i32, i32) {
    %c0_i32 = arith.constant 0 : i32
    %c0_i32_0 = arith.constant 0 : i32
    %c0_i32_1 = arith.constant 0 : i32
    return %c0_i32, %c0_i32_0 : i32, i32
  }
  func.func @transform_4(%arg0: i32) -> (i32, i32) {
    %c0_i32 = arith.constant 0 : i32
    %c0_i32_0 = arith.constant 0 : i32
    %c0_i32_1 = arith.constant 0 : i32
    return %c0_i32, %c0_i32_0 : i32, i32
  }
  func.func @transform_5(%arg0: i32) -> (i32, i32) {
    %c0_i32 = arith.constant 0 : i32
    %c0_i32_0 = arith.constant 0 : i32
    %c0_i32_1 = arith.constant 0 : i32
    return %c0_i32, %c0_i32_0 : i32, i32
  }
  func.func @transform_6(%arg0: i32) -> (i32, i32, i32) {
    %c0_i32 = arith.constant 0 : i32
    %c0_i32_0 = arith.constant 0 : i32
    %c0_i32_1 = arith.constant 0 : i32
    return %c0_i32, %arg0, %c0_i32_0 : i32, i32, i32
  }
}

</mosaic_0001>

<bundles_post_ra>
// kernel: dual_rnn_block.5
= control target key start
LH: loop header
LB: loop body
LE: loop exit
PB: predicated region body
PF: predicated region fallthrough
CT: control target
= control target key end

     0   :  { %s718_s15 = smov 0   ;;  %s720_s16 = smov 0   ;;  %s826_s0 = inlined_call_operand.vmem [shape: f32[8,16,16], index: 0, kind: input, shape index: {}]   ;;  %s827_s1 = inlined_call_operand.vmem [shape: f32[8,16,16], index: 1, kind: input, shape index: {}]   ;;  %s828_s2 = inlined_call_operand.vmem [shape: f32[1,1,16], index: 2, kind: input, shape index: {}]   ;;  %s829_s3 = inlined_call_operand.vmem [shape: f32[1,1,16], index: 3, kind: input, shape index: {}]   ;;  %s830_s4 = inlined_call_operand.vmem [shape: f32[8,16,16], index: 4, kind: output, shape index: {}]  }
   0x1   :  { %s722_s17 = smov 0  }
   0x2 LB: > { %s621_s18 = sadd.s32 4294967295, %s691_s17   ;;  %s735_s19 = sadd.s32 1, %s691_s17   ;;  %s691_s17 = sphi %s722_s17, %s835_s17   ;;  %s687_s16 = sphi %s720_s16, %s834_s16   ;;  %s683_s15 = sphi %s718_s15, %s833_s15  }
   0x3   : > { %s18_s20 = ssub.s32 %s691_s17, %s735_s19  ;;  %s21_s21 = sadd.s32 1, %s687_s16 }
   0x4   : > { %p19_p0 = scmp.eq.s32.totalorder %s18_s20, 0  ;;  %p28_p1 = scmp.ne.s32.totalorder %s687_s16, %s683_s15 }
   0x5   : > { %p29_p2 = scmp.eq.s32.totalorder %s691_s17, 0  ;;  %p126_p3 = scmp.eq.s32.totalorder %s621_s18, 1 }
   0x6   : > { %s746_s22 = scalar_select %p19_p0, %s687_s16, %s21_s21  }
   0x7   : > { %p748_p4 = por %p29_p2, %p28_p1  ;;  %p752_p5 = por %p126_p3, %p28_p1 }
   0x8   : > { %p624_p6 = scmp.ge.s32.totalorder %s691_s17, 2 }
   0xa   : > { %154 = sbr.rel (%p624_p6) target bundleno = 33 (0x21), region = 24 }
  0x11   : > { %157 = sbr.rel (!%p748_p4) target bundleno = 25 (0x19), region = 28  ;;  %s159_s25 = sand.u32 (%p748_p4), 1, %s687_s16  }
  0x12   : > { %s626_s26 = sshll.u32 (%p748_p4), %s691_s17, 3  ;;  %s625_s27 = sshll.u32 (%p748_p4), %s159_s25, 6 }
  0x13   : > { %s163_s30 = scalar_lea.vmem (%p748_p4), %s826_s0, %s626_s26  ;;  %s161_s5 = scalar_lea.vmem (%p748_p4), [#allocation2], %s625_s27 }
  0x14   : > { %v205_v0 = vld [vmem:[%s163_s30] sm:$0xff] (%p748_p4)  ;;  %v207_v1 = vld [vmem:[%s163_s30 + $0x10] sm:$0xff] (%p748_p4) }
  0x15   : > { %v209_v2 = vld [vmem:[%s163_s30 + $0x20] sm:$0xff] (%p748_p4)  ;;  %206 = vst [vmem:[%s161_s5] sm:$0xff] (%p748_p4), %v205_v0  ;;  %208 = vst [vmem:[%s161_s5 + $0x8] sm:$0xff] (%p748_p4), %v207_v1  ;;  %v211_v3 = vld [vmem:[%s163_s30 + $0x30] sm:$0xff] (%p748_p4) }
  0x16   : > { %210 = vst [vmem:[%s161_s5 + $0x10] sm:$0xff] (%p748_p4), %v209_v2  ;;  %v213_v4 = vld [vmem:[%s163_s30 + $0x40] sm:$0xff] (%p748_p4)  ;;  %v215_v5 = vld [vmem:[%s163_s30 + $0x50] sm:$0xff] (%p748_p4)  ;;  %212 = vst [vmem:[%s161_s5 + $0x18] sm:$0xff] (%p748_p4), %v211_v3 }
  0x17   : > { %214 = vst [vmem:[%s161_s5 + $0x20] sm:$0xff] (%p748_p4), %v213_v4  ;;  %216 = vst [vmem:[%s161_s5 + $0x28] sm:$0xff] (%p748_p4), %v215_v5  ;;  %v217_v6 = vld [vmem:[%s163_s30 + $0x60] sm:$0xff] (%p748_p4)  ;;  %v219_v7 = vld [vmem:[%s163_s30 + $0x70] sm:$0xff] (%p748_p4) }
  0x18   : > { %218 = vst [vmem:[%s161_s5 + $0x30] sm:$0xff] %v217_v6  ;;  %220 = vst [vmem:[%s161_s5 + $0x38] sm:$0xff] %v219_v7 }
  0x19 PF: > { %226 = sbr.rel (!%p748_p4) target bundleno = 33 (0x21), region = 66  ;;  %s228_s6 = sand.u32 (%p748_p4), 1, %s687_s16  }
  0x1a   : > { %s628_s7 = sshll.u32 (%p748_p4), %s691_s17, 3  ;;  %s627_s8 = sshll.u32 (%p748_p4), %s228_s6, 6 }
  0x1b   : > { %s232_s11 = scalar_lea.vmem (%p748_p4), %s827_s1, %s628_s7  ;;  %s230_s12 = scalar_lea.vmem (%p748_p4), [#allocation3], %s627_s8 }
  0x1c   : > { %v274_v8 = vld [vmem:[%s232_s11] sm:$0xff] (%p748_p4)  ;;  %v276_v9 = vld [vmem:[%s232_s11 + $0x10] sm:$0xff] (%p748_p4) }
  0x1d   : > { %v278_v10 = vld [vmem:[%s232_s11 + $0x20] sm:$0xff] (%p748_p4)  ;;  %275 = vst [vmem:[%s230_s12] sm:$0xff] (%p748_p4), %v274_v8  ;;  %277 = vst [vmem:[%s230_s12 + $0x8] sm:$0xff] (%p748_p4), %v276_v9  ;;  %v280_v11 = vld [vmem:[%s232_s11 + $0x30] sm:$0xff] (%p748_p4) }
  0x1e   : > { %279 = vst [vmem:[%s230_s12 + $0x10] sm:$0xff] (%p748_p4), %v278_v10  ;;  %v282_v12 = vld [vmem:[%s232_s11 + $0x40] sm:$0xff] (%p748_p4)  ;;  %v284_v13 = vld [vmem:[%s232_s11 + $0x50] sm:$0xff] (%p748_p4)  ;;  %281 = vst [vmem:[%s230_s12 + $0x18] sm:$0xff] (%p748_p4), %v280_v11 }
  0x1f   : > { %283 = vst [vmem:[%s230_s12 + $0x20] sm:$0xff] (%p748_p4), %v282_v12  ;;  %285 = vst [vmem:[%s230_s12 + $0x28] sm:$0xff] (%p748_p4), %v284_v13  ;;  %v286_v14 = vld [vmem:[%s232_s11 + $0x60] sm:$0xff] (%p748_p4)  ;;  %v288_v15 = vld [vmem:[%s232_s11 + $0x70] sm:$0xff] (%p748_p4) }
  0x20   : > { %287 = vst [vmem:[%s230_s12 + $0x30] sm:$0xff] %v286_v14  ;;  %289 = vst [vmem:[%s230_s12 + $0x38] sm:$0xff] %v288_v15 }
  0x21 PF: > { %p629_p7 = scmp.ge.s32.totalorder %s691_s17, 1  ;;  %p294_p8 = scmp.lt.s32.totalorder %s691_s17, 3 }
  0x23   : > { %p295_p9 = pnand %p629_p7, %p294_p8 }
  0x24   : > { %s301_s13 = sand.u32 (!%p295_p9), 1, %s683_s15   ;;  %vm344_vm0 = vcmask (!%p295_p9), 130048  }
  0x25   : > { %298 = sbr.rel (%p295_p9) target bundleno = 521 (0x209), region = 104  ;;  %s774_s14 = sshll.u32 (!%p295_p9), %s301_s13, 6 }
  0x26   : > { %s303_s20 = scalar_lea.vmem (!%p295_p9), [#allocation2], %s774_s14  ;;  %s310_s28 = scalar_lea.vmem (!%p295_p9), [#allocation3], %s774_s14 }
  0x27   : > { %v336_v16 = vld [vmem:[%s303_s20] sm:$0xff] (!%p295_p9)  ;;  %v337_v17 = vld [vmem:[%s303_s20 + $0x8] sm:$0xff] (!%p295_p9)  ;;  %v338_v18 = vld [vmem:[%s303_s20 + $0x10] sm:$0xff] (!%p295_p9)  ;;  %s335_s29 = scalar_lea.vmem (!%p295_p9), [#allocation4], %s774_s14 }
  0x28   : > { %v339_v19 = vld [vmem:[%s303_s20 + $0x18] sm:$0xff] (!%p295_p9)  ;;  %v345_v20 = vsel (!%p295_p9), %vm344_vm0, %v336_v16, 0.0  ;;  %v346_v21 = vsel (!%p295_p9), %vm344_vm0, %v337_v17, 0.0  ;;  %v348_v22 = vsel (!%p295_p9), %vm344_vm0, %v338_v18, 0.0  ;;  %v340_v23 = vld [vmem:[%s303_s20 + $0x20] sm:$0xff] (!%p295_p9)  ;;  %v341_v26 = vld [vmem:[%s303_s20 + $0x28] sm:$0xff] (!%p295_p9) }
  0x29   : > { %v347_v24 = vadd.f32 (!%p295_p9), %v346_v21, %v345_v20  ;;  %v350_v25 = vsel (!%p295_p9), %vm344_vm0, %v339_v19, 0.0  ;;  %v352_v28 = vsel (!%p295_p9), %vm344_vm0, %v340_v23, 0.0  ;;  %v342_v29 = vld [vmem:[%s303_s20 + $0x30] sm:$0xff] (!%p295_p9)  ;;  %v354_v31 = vsel (!%p295_p9), %vm344_vm0, %v341_v26, 0.0  ;;  %v343_v32 = vld [vmem:[%s303_s20 + $0x38] sm:$0xff] (!%p295_p9) }
  0x2a   : > { %v356_v34 = vsel (!%p295_p9), %vm344_vm0, %v342_v29, 0.0  ;;  %v358_v36 = vsel (!%p295_p9), %vm344_vm0, %v343_v32, 0.0 }
  0x2b   : > { %v349_v27 = vadd.f32 (!%p295_p9), %v348_v22, %v347_v24 }
  0x2c   : > { %s636_s30 = sshll.u32 (%p752_p5), %s621_s18, 3 }
  0x2d   : > { %v351_v30 = vadd.f32 %v350_v25, %v349_v27  ;;  %s486_s7 = scalar_lea.vmem (%p752_p5), %s830_s4, %s636_s30 }
  0x2f   : > { %v353_v33 = vadd.f32 %v352_v28, %v351_v30 }
  0x31   : > { %v355_v35 = vadd.f32 %v354_v31, %v353_v33 }
  0x33   : > { %v357_v37 = vadd.f32 %v356_v34, %v355_v35  ;;  %v634_v35 = vld [vmem:[%s829_s3] ss:$0 sm:$0xff] }
  0x35   : > { %v359_v38 = vadd.f32 %v358_v36, %v357_v37  ;;  %v454_v36 = vld [vmem:[%s310_s28] sm:$0xff]  ;;  %v455_v37 = vld [vmem:[%s310_s28 + $0x8] sm:$0xff] }
  0x37   : > { %360 = vadd.xlane.f32.xlu0 %v359_v38 }
  0xc4   : > { %v361_v39 = vpop.xlane.xlu0 %360 }
  0xc5   : > { %v362_v40 = vrot.slane %v361_v39, 4 }
  0xc7   : > { %v363_v41 = vadd.f32 %v362_v40, %v361_v39 }
  0xc9   : > { %v364_v42 = vrot.slane %v363_v41, 2 }
  0xcb   : > { %v365_v43 = vadd.f32 %v364_v42, %v363_v41  ;;  %v456_v42 = vld [vmem:[%s310_s28 + $0x10] sm:$0xff] }
  0xcd   : > { %v366_v44 = vrot.slane %v365_v43, 1 }
  0xcf   : > { %v367_v45 = vadd.f32 %v366_v44, %v365_v43  ;;  %v457_v43 = vld [vmem:[%s310_s28 + $0x18] sm:$0xff]  ;;  %v458_v44 = vld [vmem:[%s310_s28 + $0x20] sm:$0xff] }
  0xd1   : > { %639 = vpush %v367_v45 }
 0x102   : > { %s640_s15 = spop %639 }
 0x103   : > { %v369_v46 = vstv %s640_s15 }
 0x104   : > { %v371_v47 = vmul.f32 0.0009765625, %v369_v46 }
 0x106   : > { %v372_v48 = vsub.f32 %v336_v16, %v371_v47  ;;  %v373_v49 = vsub.f32 %v337_v17, %v371_v47  ;;  %v374_v50 = vsub.f32 %v338_v18, %v371_v47  ;;  %v375_v51 = vsub.f32 %v339_v19, %v371_v47 }
 0x107   : > { %v376_v52 = vsub.f32 %v340_v23, %v371_v47  ;;  %v377_v56 = vsub.f32 %v341_v26, %v371_v47  ;;  %v378_v61 = vsub.f32 %v342_v29, %v371_v47  ;;  %v379_v1 = vsub.f32 %v343_v32, %v371_v47  ;;  %v633_v26 = vld [vmem:[%s828_s2] ss:$0 sm:$0xff] }
 0x108   : > { %v380_v53 = vmul.f32 %v372_v48, %v372_v48  ;;  %v381_v54 = vmul.f32 %v373_v49, %v373_v49  ;;  %v382_v55 = vmul.f32 %v374_v50, %v374_v50  ;;  %v383_v57 = vmul.f32 %v375_v51, %v375_v51 }
 0x109   : > { %v384_v62 = vmul.f32 %v376_v52, %v376_v52  ;;  %v385_v2 = vmul.f32 %v377_v56, %v377_v56  ;;  %v386_v5 = vmul.f32 %v378_v61, %v378_v61  ;;  %v387_v8 = vmul.f32 %v379_v1, %v379_v1 }
 0x10a   : > { %v388_v58 = vsel %vm344_vm0, %v380_v53, 0.0  ;;  %v389_v59 = vsel %vm344_vm0, %v381_v54, 0.0  ;;  %v391_v63 = vsel %vm344_vm0, %v382_v55, 0.0  ;;  %v393_v3 = vsel %vm344_vm0, %v383_v57, 0.0 }
 0x10b   : > { %v390_v60 = vadd.f32 %v389_v59, %v388_v58  ;;  %v395_v6 = vsel %vm344_vm0, %v384_v62, 0.0  ;;  %v397_v9 = vsel %vm344_vm0, %v385_v2, 0.0  ;;  %v399_v11 = vsel %vm344_vm0, %v386_v5, 0.0 }
 0x10c   : > { %v401_v13 = vsel %vm344_vm0, %v387_v8, 0.0 }
 0x10d   : > { %v392_v0 = vadd.f32 %v391_v63, %v390_v60 }
 0x10f   : > { %v394_v4 = vadd.f32 %v393_v3, %v392_v0 }
 0x111   : > { %v396_v7 = vadd.f32 %v395_v6, %v394_v4 }
 0x113   : > { %v398_v10 = vadd.f32 %v397_v9, %v396_v7 }
 0x115   : > { %v400_v12 = vadd.f32 %v399_v11, %v398_v10 }
 0x117   : > { %v402_v14 = vadd.f32 %v401_v13, %v400_v12 }
 0x119   : > { %403 = vadd.xlane.f32.xlu0 %v402_v14 }
 0x1a6   : > { %v404_v15 = vpop.xlane.xlu0 %403 }
 0x1a7   : > { %v405_v16 = vrot.slane %v404_v15, 4 }
 0x1a9   : > { %v406_v17 = vadd.f32 %v405_v16, %v404_v15 }
 0x1ab   : > { %v407_v18 = vrot.slane %v406_v17, 2 }
 0x1ad   : > { %v408_v19 = vadd.f32 %v407_v18, %v406_v17 }
 0x1af   : > { %v409_v20 = vrot.slane %v408_v19, 1 }
 0x1b1   : > { %v410_v21 = vadd.f32 %v409_v20, %v408_v19 }
 0x1b3   : > { %641 = vpush %v410_v21 }
 0x1e4   : > { %s642_s21 = spop %641 }
 0x1e5   : > { %v412_v22 = vstv %s642_s21 }
 0x1e6   : > { %v413_v23 = vmul.f32 0.0009765625, %v412_v22 }
 0x1e8   : > { %v414_v24 = vadd.f32 1e-08, %v413_v23 }
 0x1ea   : > { %667 = vrsqrt.f32 %v414_v24 }
 0x1f4   : > { %v668_v25 = vpop.eup %667 }
 0x1f5   : > { %v416_v27 = vmul.f32 %v668_v25, %v372_v48  ;;  %v417_v28 = vmul.f32 %v668_v25, %v373_v49  ;;  %v418_v29 = vmul.f32 %v668_v25, %v374_v50  ;;  %v419_v30 = vmul.f32 %v668_v25, %v375_v51  ;;  %v459_v49 = vld [vmem:[%s310_s28 + $0x28] sm:$0xff]  ;;  %v460_v50 = vld [vmem:[%s310_s28 + $0x30] sm:$0xff]  ;;  %v461_v51 = vld [vmem:[%s310_s28 + $0x38] sm:$0xff] }
 0x1f6   : > { %v420_v31 = vmul.f32 %v668_v25, %v376_v52  ;;  %v421_v32 = vmul.f32 %v668_v25, %v377_v56  ;;  %v422_v33 = vmul.f32 %v668_v25, %v378_v61  ;;  %v423_v34 = vmul.f32 %v668_v25, %v379_v1 }
 0x1f7   : > { %v431_v38 = vmul.f32 %v633_v26, %v416_v27  ;;  %v432_v39 = vmul.f32 %v633_v26, %v417_v28  ;;  %v433_v40 = vmul.f32 %v633_v26, %v418_v29  ;;  %v434_v41 = vmul.f32 %v633_v26, %v419_v30 }
 0x1f8   : > { %v435_v45 = vmul.f32 %v633_v26, %v420_v31  ;;  %v436_v46 = vmul.f32 %v633_v26, %v421_v32  ;;  %v437_v47 = vmul.f32 %v633_v26, %v422_v33  ;;  %v438_v48 = vmul.f32 %v633_v26, %v423_v34 }
 0x1f9   : > { %v446_v52 = vadd.f32 %v634_v35, %v431_v38  ;;  %v447_v53 = vadd.f32 %v634_v35, %v432_v39  ;;  %v448_v54 = vadd.f32 %v634_v35, %v433_v40  ;;  %v449_v55 = vadd.f32 %v634_v35, %v434_v41 }
 0x1fa   : > { %v450_v56 = vadd.f32 %v634_v35, %v435_v45  ;;  %v451_v57 = vadd.f32 %v634_v35, %v436_v46  ;;  %v452_v58 = vadd.f32 %v634_v35, %v437_v47  ;;  %v453_v59 = vadd.f32 %v634_v35, %v438_v48  ;;  %484 = sbr.rel (!%p752_p5) target bundleno = 521 (0x209), region = 116 }
 0x1fb   : > { %v462_v60 = vadd.f32 %v454_v36, %v446_v52  ;;  %v463_v61 = vadd.f32 %v455_v37, %v447_v53  ;;  %v464_v62 = vadd.f32 %v456_v42, %v448_v54  ;;  %v465_v63 = vadd.f32 %v457_v43, %v449_v55 }
 0x1fc   : > { %v466_v0 = vadd.f32 %v458_v44, %v450_v56  ;;  %v467_v1 = vadd.f32 %v459_v49, %v451_v57  ;;  %v468_v2 = vadd.f32 %v460_v50, %v452_v58  ;;  %v469_v3 = vadd.f32 %v461_v51, %v453_v59 }
 0x1fd   : > { %470 = vst.msk [vmem:[%s335_s29] sm:$0xff] %vm344_vm0, %v462_v60  ;;  %471 = vst.msk [vmem:[%s335_s29 + $0x8] sm:$0xff] %vm344_vm0, %v463_v61 }
 0x1fe   : > { %472 = vst.msk [vmem:[%s335_s29 + $0x10] sm:$0xff] %vm344_vm0, %v464_v62  ;;  %473 = vst.msk [vmem:[%s335_s29 + $0x18] sm:$0xff] %vm344_vm0, %v465_v63 }
 0x1ff   : > { %474 = vst.msk [vmem:[%s335_s29 + $0x20] sm:$0xff] %vm344_vm0, %v466_v0  ;;  %475 = vst.msk [vmem:[%s335_s29 + $0x28] sm:$0xff] %vm344_vm0, %v467_v1 }
 0x200   : > { %476 = vst.msk [vmem:[%s335_s29 + $0x30] sm:$0xff] %vm344_vm0, %v468_v2  ;;  %477 = vst.msk [vmem:[%s335_s29 + $0x38] sm:$0xff] %vm344_vm0, %v469_v3 }
 0x204   : > { %v528_v4 = vld [vmem:[%s335_s29] sm:$0xff]  ;;  %v530_v5 = vld [vmem:[%s335_s29 + $0x8] sm:$0xff] }
 0x205   : > { %v532_v6 = vld [vmem:[%s335_s29 + $0x10] sm:$0xff]  ;;  %v534_v7 = vld [vmem:[%s335_s29 + $0x18] sm:$0xff]  ;;  %529 = vst [vmem:[%s486_s7] sm:$0xff] %v528_v4  ;;  %531 = vst [vmem:[%s486_s7 + $0x10] sm:$0xff] %v530_v5 }
 0x206   : > { %v536_v8 = vld [vmem:[%s335_s29 + $0x20] sm:$0xff]  ;;  %v538_v9 = vld [vmem:[%s335_s29 + $0x28] sm:$0xff]  ;;  %533 = vst [vmem:[%s486_s7 + $0x20] sm:$0xff] %v532_v6  ;;  %535 = vst [vmem:[%s486_s7 + $0x30] sm:$0xff] %v534_v7 }
 0x207   : > { %537 = vst [vmem:[%s486_s7 + $0x40] sm:$0xff] %v536_v8  ;;  %539 = vst [vmem:[%s486_s7 + $0x50] sm:$0xff] %v538_v9  ;;  %v540_v10 = vld [vmem:[%s335_s29 + $0x30] sm:$0xff]  ;;  %v542_v11 = vld [vmem:[%s335_s29 + $0x38] sm:$0xff] }
 0x208   : > { %541 = vst [vmem:[%s486_s7 + $0x60] sm:$0xff] %v540_v10  ;;  %543 = vst [vmem:[%s486_s7 + $0x70] sm:$0xff] %v542_v11 }
 0x209 PF: > { %p11_p10 = scmp.ge.s32.totalorder %s735_s19, 4   ;;  %s833_s15 = smov %s687_s16 }
 0x20a   : > { %s834_s16 = smov %s746_s22  ;;  %s835_s17 = smov %s735_s19 }
 0x20b   :  { %13 = sbr.rel (!%p11_p10) target bundleno = 2 (0x2), region = 193 }

// kernel: dual_rnn_block.4
= control target key start
LH: loop header
LB: loop body
LE: loop exit
PB: predicated region body
PF: predicated region fallthrough
CT: control target
= control target key end

     0   :  { %vm233_vm0 = vcmask 261120   ;;  %vm95_vm1 = vcmask 130048   ;;  %v1993_v1 = vmov 0.0   ;;  %s1994_s14 = smov 32   ;;  %vm1995_vm2 = vmmov 0   ;;  %s1996_s17 = smov 64   ;;  %s2469_s1 = inlined_call_operand.vmem [shape: bf16[16,128], index: 1, kind: input, shape index: {}]   ;;  %s2470_s0 = inlined_call_operand.vmem [shape: bf16[8,16,16], index: 0, kind: input, shape index: {}]   ;;  %s2471_s2 = inlined_call_operand.vmem [shape: bf16[32,128], index: 2, kind: input, shape index: {}]   ;;  %s2472_s3 = inlined_call_operand.vmem [shape: f32[1,128], index: 3, kind: input, shape index: {}]   ;;  %s2473_s4 = inlined_call_operand.vmem [shape: bf16[32,16], index: 4, kind: input, shape index: {}]   ;;  %s2474_s5 = inlined_call_operand.vmem [shape: f32[1,16], index: 5, kind: input, shape index: {}]   ;;  %s2475_s6 = inlined_call_operand.vmem [shape: f32[8,16,16], index: 6, kind: output, shape index: {}]  }
   0x1   :  { %v1837_v0 = vld [vmem:[%s2469_s1] sm:$0xff]   ;;  %234 = vst.msk [vmem:[#allocation2] sm:$0xff] %vm233_vm0, %v1993_v1  ;;  %235 = vst.msk [vmem:[#allocation2 + $0x8] sm:$0xff] %vm233_vm0, %v1993_v1  ;;  %v1839_v3 = vld [vmem:[%s2470_s0 + $0x28] sm:$0xff]   ;;  %s1997_s22 = smov 96  }
   0x2   :  { %236 = vst.msk [vmem:[#allocation3] sm:$0xff] %vm233_vm0, %v1993_v1  ;;  %237 = vst.msk [vmem:[#allocation3 + $0x8] sm:$0xff] %vm233_vm0, %v1993_v1  ;;  %v1838_v2 = vld [vmem:[%s2470_s0 + $0x20] sm:$0xff]   ;;  %1830 = vmatprep.subr.bf16.mxu1 %v1837_v0  ;;  %1728 = vmatprep.subr.bf16.mxu0 %v1837_v0  ;;  %v1841_v5 = vld [vmem:[%s2470_s0 + $0x30] sm:$0xff]  }
   0x3   :  { %1831 = vmatpush3.bf16.msra.mxu1 %v1837_v0  ;;  %1738 = vmatprep.mubr.msk.bf16.mxu1 %vm95_vm1, %v1838_v2  ;;  %v1840_v4 = vld [vmem:[%s2471_s2] sm:$0xff]   ;;  %v1843_v6 = vld [vmem:[%s2471_s2 + $0x8] sm:$0xff]   ;;  %v1842_v10 = vld [vmem:[%s2470_s0 + $0x38] sm:$0xff]  }
   0x4   :  { %1746 = vmatprep.subr.bf16.mxu1 %v1993_v1  ;;  %1729 = vmatpush3.bf16.msra.mxu0 %v1837_v0  ;;  %v1844_v7 = vld [vmem:[%s2470_s0] sm:$0xff]   ;;  %v1845_v8 = vld [vmem:[%s2470_s0 + $0x8] sm:$0xff]  }
   0x5   :  { %1778 = vmatprep.subr.bf16.mxu0 %v1993_v1  ;;  %1730 = vmatprep.mubr.msk.bf16.mxu0 %vm95_vm1, %v1844_v7  ;;  %v2108_v27 = vld [vmem:[%s2472_s3] ss:$0 sm:$0xff]  ;;  %v1847_v61 = vld [vmem:[%s2471_s2 + $0x8] sm:$0xff]  }
   0x6   :  { %1739 = vmatmul.mubr.msk.bf16.vlgmr.msra.gmra.mrb[0].mxu1 %vm95_vm1, %v1839_v3  ;;  %v1846_v60 = vld [vmem:[%s2471_s2] sm:$0xff]  }
   0x7   :  { %1747 = vmatpush3.bf16.msra.mxu1 %v1840_v4  ;;  %1742 = vmatprep.mubr.msk.bf16.mxu1 %vm95_vm1, %v1841_v5 }
   0x8   :  { %1748 = vmatprep.subr.bf16.mxu1 %v1993_v1  ;;  %1731 = vmatmul.mubr.msk.bf16.vlgmr.msra.gmra.mrb[0].mxu0 %vm95_vm1, %v1845_v8  ;;  %v238_v12 = vld [vmem:[#allocation2] sm:$0xff]  ;;  %v239_v13 = vld [vmem:[#allocation2 + $0x8] sm:$0xff] }
   0x9   :  { %v240_v9 = vld [vmem:[#allocation3] sm:$0xff]  ;;  %v241_v11 = vld [vmem:[#allocation3 + $0x8] sm:$0xff]  ;;  %v244_v14 = vpack.c.bf16 %v239_v13, %v238_v12 }
   0xa   :  { %323 = vrot.lane.b32.xlu1 %v240_v9, %s1994_s14 }
   0xb   :  { %1749 = vmatpush3.bf16.msra.mxu1 %v1843_v6 }
   0xc   :  { %1754 = vmatprep.subr.bf16.mxu1 %v1993_v1 }
   0xe   :  { %1743 = vmatmul.mubr.msk.bf16.gmra.mrb[4].mxu1 %vm95_vm1, %v1842_v10  ;;  %325 = vrot.lane.b32.xlu1 %v241_v11, %s1994_s14 }
   0xf   :  { %1750 = vmatprep.mubr.msk.bf16.mxu1 %vm1995_vm2, %v1993_v1 }
  0x16   :  { %1751 = vmatmul.mubr.msk.bf16.vlgmr.msra.gmra.mrb[8].mxu1 %vm233_vm0, %v244_v14 }
  0x17   :  { %1758 = vmatprep.mubr.msk.bf16.mxu1 %vm1995_vm2, %v1993_v1  ;;  %1755 = vmatpush3.bf16.msra.mxu1 %v1846_v60 }
  0x18   :  { %1756 = vmatprep.subr.bf16.mxu1 %v1993_v1 }
  0x1b   :  { %1757 = vmatpush3.bf16.msra.mxu1 %v1847_v61 }
  0x1c   :  { %1762 = vmatprep.subr.bf16.mxu1 %v1993_v1 }
  0x7c   :  { %v324_v50 = vpop.permute.xlu1 %323 }
  0x80   :  { %v326_v52 = vpop.permute.xlu1 %325 }
  0xd9   :  { %v2085_v15 = vpop.f32.mrb[0].mxu1 }
  0xda   :  { %v2087_v16 = vpop.f32.mrb[1].mxu1 }
  0xdb   :  { %v2089_v17 = vpop.f32.mrb[2].mxu1  ;;  %v2093_v19 = vpop.f32.mrb[0].mxu0 }
  0xdc   :  { %v2091_v18 = vpop.f32.mrb[3].mxu1  ;;  %v154_v20 = vpop.f32.mrb[1].mxu0  ;;  %v163_v10 = vadd.f32 %v2093_v19, %v2108_v27 }
  0xdd   :  { %v2095_v21 = vpop.f32.mrb[2].mxu0  ;;  %v155_v28 = vadd.f32 %v2108_v27, %v154_v20 }
  0xde   :  { %v157_v22 = vpop.f32.mrb[3].mxu0  ;;  %v166_v12 = vadd.f32 %v2095_v21, %v2108_v27 }
  0xdf   :  { %v158_v30 = vadd.f32 %v2108_v27, %v157_v22 }
  0xe1   :  { %v2097_v23 = vpop.f32.mrb[4].mxu1 }
  0xe2   :  { %v2099_v24 = vpop.f32.mrb[5].mxu1 }
  0xe3   :  { %v2101_v25 = vpop.f32.mrb[6].mxu1 }
  0xe4   :  { %v2103_v26 = vpop.f32.mrb[7].mxu1 }
  0xe9   :  { %v298_v29 = vpop.f32.mrb[8].mxu1 }
  0xea   :  { %v305_v31 = vadd.f32 %v298_v29, %v155_v28  ;;  %v1752_v32 = vpop.f32.mrb[9].mxu1 }
  0xeb   :  { %v301_v33 = vpop.f32.mrb[10].mxu1 }
  0xec   :  { %1864 = vtanh.f32 %v305_v31  ;;  %v306_v34 = vadd.f32 %v301_v33, %v158_v30  ;;  %v1753_v35 = vpop.f32.mrb[11].mxu1  ;;  %v1637_v38 = vmul.f32 -1.442695, %v305_v31 }
  0xee   :  { %1866 = vtanh.f32 %v306_v34  ;;  %v1638_v39 = vmul.f32 -1.442695, %v306_v34 }
  0xef   :  { %1868 = vpow2.f32 %v1637_v38 }
  0xf0   :  { %1870 = vpow2.f32 %v1638_v39 }
  0xf6   :  { %v1865_v36 = vpop.eup %1864 }
  0xf7   :  { %333 = vrot.lane.b32.xlu0 %v1865_v36, %s1996_s17 }
  0xf8   :  { %v1867_v37 = vpop.eup %1866 }
  0xf9   :  { %v1869_v40 = vpop.eup %1868 }
  0xfa   :  { %v313_v41 = vadd.f32 1.0, %v1869_v40  ;;  %v1871_v42 = vpop.eup %1870 }
  0xfb   :  { %335 = vrot.lane.b32.xlu0 %v1867_v37, %s1996_s17  ;;  %v314_v43 = vadd.f32 1.0, %v1871_v42 }
  0xfc   :  { %1872 = vrcp.f32 %v313_v41 }
  0xfd   :  { %1874 = vrcp.f32 %v314_v43 }
 0x106   :  { %v1873_v44 = vpop.eup %1872 }
 0x107   :  { %v1875_v47 = vpop.eup %1874  ;;  %v329_v51 = vmul.f32 %v1873_v44, %v324_v50 }
 0x108   :  { %v330_v55 = vmul.f32 %v1875_v47, %v326_v52 }
 0x169   :  { %v334_v45 = vpop.permute.xlu0 %333 }
 0x16a   :  { %v339_v46 = vmul.f32 %v1873_v44, %v334_v45 }
 0x16c   :  { %343 = vrot.lane.b32.xlu0 %v339_v46, %s1994_s14 }
 0x16d   :  { %v336_v48 = vpop.permute.xlu0 %335 }
 0x16e   :  { %v340_v49 = vmul.f32 %v1875_v47, %v336_v48 }
 0x170   :  { %345 = vrot.lane.b32.xlu1 %v340_v49, %s1994_s14 }
 0x1de   :  { %v344_v53 = vpop.permute.xlu0 %343 }
 0x1df   :  { %v349_v54 = vadd.f32 %v344_v53, %v329_v51  ;;  %v1848_v53 = vld [vmem:[%s2471_s2] sm:$0xff]  }
 0x1e1   :  { %1876 = vtanh.f32 %v349_v54 }
 0x1e2   :  { %v346_v56 = vpop.permute.xlu1 %345 }
 0x1e3   :  { %v350_v57 = vadd.f32 %v346_v56, %v330_v55  ;;  %v1850_v55 = vld [vmem:[%s2470_s0 + $0x18] sm:$0xff]   ;;  %v1851_v56 = vld [vmem:[%s2471_s2 + $0x8] sm:$0xff]  }
 0x1e5   :  { %1878 = vtanh.f32 %v350_v57 }
 0x1eb   :  { %v1877_v58 = vpop.eup %1876 }
 0x1ec   :  { %355 = vrot.lane.b32.xlu0 %v1877_v58, %s1996_s17 }
 0x1ef   :  { %v1879_v59 = vpop.eup %1878 }
 0x1f0   :  { %357 = vrot.lane.b32.xlu1 %v1879_v59, %s1996_s17 }
 0x25e   :  { %v356_v62 = vpop.permute.xlu0 %355 }
 0x25f   :  { %v361_v63 = vmul.f32 %v1873_v44, %v356_v62 }
 0x261   :  { %365 = vrot.lane.b32.xlu0 %v361_v63, %s1994_s14 }
 0x262   :  { %v358_v0 = vpop.permute.xlu1 %357 }
 0x263   :  { %v362_v2 = vmul.f32 %v1875_v47, %v358_v0 }
 0x265   :  { %367 = vrot.lane.b32.xlu1 %v362_v2, %s1994_s14  ;;  %375 = vrot.lane.b32.xlu0 %v349_v54, %s1997_s22  ;;  %v1849_v54 = vld [vmem:[%s2470_s0 + $0x10] sm:$0xff]  }
 0x266   :  { %1734 = vmatprep.mubr.msk.bf16.mxu0 %vm95_vm1, %v1849_v54 }
 0x267   :  { %1735 = vmatmul.mubr.msk.bf16.gmra.mrb[4].mxu0 %vm95_vm1, %v1850_v55 }
 0x268   :  { %1782 = vmatprep.mubr.msk.bf16.mxu0 %vm1995_vm2, %v1993_v1 }
 0x269   :  { %377 = vrot.lane.b32.xlu1 %v350_v57, %s1997_s22 }
 0x2d3   :  { %v366_v3 = vpop.permute.xlu0 %365 }
 0x2d4   :  { %371 = vst.msk [vmem:[#allocation2] sm:$0xff] %vm233_vm0, %v366_v3  ;;  %383 = vst.msk [vmem:[#allocation5] sm:$0xff] %vm233_vm0, %v366_v3 }
 0x2d7   :  { %v368_v4 = vpop.permute.xlu1 %367  ;;  %v376_v5 = vpop.permute.xlu0 %375 }
 0x2d8   :  { %372 = vst.msk [vmem:[#allocation2 + $0x8] sm:$0xff] %vm233_vm0, %v368_v4  ;;  %384 = vst.msk [vmem:[#allocation5 + $0x8] sm:$0xff] %vm233_vm0, %v368_v4 }
 0x2d9   :  { %381 = vst.msk [vmem:[#allocation3] sm:$0xff] %vm233_vm0, %v376_v5 }
 0x2db   :  { %v378_v6 = vpop.permute.xlu1 %377  ;;  %v385_v7 = vld [vmem:[#allocation2] sm:$0xff] }
 0x2dc   :  { %382 = vst.msk [vmem:[#allocation3 + $0x8] sm:$0xff] %vm233_vm0, %v378_v6 }
 0x2df   :  { %v386_v8 = vld [vmem:[#allocation2 + $0x8] sm:$0xff] }
 0x2e0   :  { %v392_v9 = vpack.c.bf16 %v386_v8, %v385_v7  ;;  %v387_v31 = vld [vmem:[#allocation3] sm:$0xff] }
 0x2e2   :  { %1759 = vmatmul.mubr.msk.bf16.vlgmr.msra.gmra.mrb[12].mxu1 %vm233_vm0, %v392_v9 }
 0x2e3   :  { %1766 = vmatprep.mubr.msk.bf16.mxu1 %vm1995_vm2, %v1993_v1  ;;  %v388_v19 = vld [vmem:[#allocation3 + $0x8] sm:$0xff]  ;;  %1763 = vmatpush3.bf16.msra.mxu1 %v1848_v53  ;;  %v1853_v53 = vld [vmem:[%s2471_s2 + $0x8] sm:$0xff]  }
 0x2e4   :  { %1764 = vmatprep.subr.bf16.mxu1 %v1993_v1 }
 0x2e7   :  { %1765 = vmatpush3.bf16.msra.mxu1 %v1851_v56 }
 0x2e8   :  { %1770 = vmatprep.subr.bf16.mxu1 %v1993_v1 }
 0x33a   :  { %v2182_v5 = vpop.f32.mrb[4].mxu0 }
 0x33b   :  { %v170_v6 = vpop.f32.mrb[5].mxu0 }
 0x33c   :  { %v2184_v7 = vpop.f32.mrb[6].mxu0  ;;  %v171_v9 = vadd.f32 %v2108_v27, %v170_v6 }
 0x33d   :  { %v173_v8 = vpop.f32.mrb[7].mxu0 }
 0x3b5   :  { %v446_v11 = vpop.f32.mrb[12].mxu1 }
 0x3b6   :  { %v453_v13 = vadd.f32 %v446_v11, %v163_v10  ;;  %v1760_v14 = vpop.f32.mrb[13].mxu1  ;;  %v174_v11 = vadd.f32 %v2108_v27, %v173_v8 }
 0x3b7   :  { %v449_v20 = vpop.f32.mrb[14].mxu1 }
 0x3b8   :  { %1880 = vtanh.f32 %v453_v13  ;;  %v454_v22 = vadd.f32 %v449_v20, %v166_v12  ;;  %v1761_v28 = vpop.f32.mrb[15].mxu1  ;;  %v1642_v21 = vmul.f32 -1.442695, %v453_v13 }
 0x3ba   :  { %1882 = vtanh.f32 %v454_v22  ;;  %v1643_v32 = vmul.f32 -1.442695, %v454_v22 }
 0x3bb   :  { %1884 = vpow2.f32 %v1642_v21 }
 0x3bc   :  { %1886 = vpow2.f32 %v1643_v32 }
 0x3c2   :  { %v1881_v29 = vpop.eup %1880 }
 0x3c3   :  { %481 = vrot.lane.b32.xlu0 %v1881_v29, %s1996_s17 }
 0x3c4   :  { %v1883_v30 = vpop.eup %1882 }
 0x3c5   :  { %483 = vrot.lane.b32.xlu1 %v1883_v30, %s1996_s17  ;;  %v1885_v33 = vpop.eup %1884 }
 0x3c6   :  { %v1887_v34 = vpop.eup %1886  ;;  %v461_v35 = vadd.f32 1.0, %v1885_v33 }
 0x3c7   :  { %471 = vrot.lane.b32.xlu0 %v387_v31, %s1994_s14  ;;  %v462_v36 = vadd.f32 1.0, %v1887_v34 }
 0x3c8   :  { %1888 = vrcp.f32 %v461_v35 }
 0x3c9   :  { %473 = vrot.lane.b32.xlu1 %v388_v19, %s1994_s14  ;;  %1890 = vrcp.f32 %v462_v36 }
 0x3d2   :  { %v1889_v37 = vpop.eup %1888 }
 0x3d3   :  { %v1891_v40 = vpop.eup %1890 }
 0x435   :  { %v482_v38 = vpop.permute.xlu0 %481 }
 0x436   :  { %v487_v39 = vmul.f32 %v1889_v37, %v482_v38 }
 0x437   :  { %v484_v41 = vpop.permute.xlu1 %483 }
 0x438   :  { %491 = vrot.lane.b32.xlu0 %v487_v39, %s1994_s14  ;;  %v488_v42 = vmul.f32 %v1891_v40, %v484_v41 }
 0x439   :  { %v472_v43 = vpop.permute.xlu0 %471 }
 0x43a   :  { %493 = vrot.lane.b32.xlu1 %v488_v42, %s1994_s14  ;;  %v477_v44 = vmul.f32 %v1889_v37, %v472_v43 }
 0x43b   :  { %v474_v45 = vpop.permute.xlu1 %473 }
 0x43c   :  { %v478_v48 = vmul.f32 %v1891_v40, %v474_v45 }
 0x4aa   :  { %v492_v46 = vpop.permute.xlu0 %491 }
 0x4ab   :  { %v497_v47 = vadd.f32 %v492_v46, %v477_v44 }
 0x4ac   :  { %v494_v49 = vpop.permute.xlu1 %493 }
 0x4ad   :  { %1892 = vtanh.f32 %v497_v47  ;;  %v498_v50 = vadd.f32 %v494_v49, %v478_v48 }
 0x4af   :  { %1894 = vtanh.f32 %v498_v50 }
 0x4b7   :  { %v1893_v51 = vpop.eup %1892 }
 0x4b8   :  { %503 = vrot.lane.b32.xlu0 %v1893_v51, %s1996_s17 }
 0x4b9   :  { %v1895_v52 = vpop.eup %1894 }
 0x4ba   :  { %505 = vrot.lane.b32.xlu1 %v1895_v52, %s1996_s17  ;;  %v1852_v52 = vld [vmem:[%s2471_s2] sm:$0xff]  }
 0x52a   :  { %v504_v57 = vpop.permute.xlu0 %503 }
 0x52b   :  { %v509_v58 = vmul.f32 %v1889_v37, %v504_v57 }
 0x52c   :  { %v506_v59 = vpop.permute.xlu1 %505 }
 0x52d   :  { %513 = vrot.lane.b32.xlu0 %v509_v58, %s1994_s14  ;;  %v510_v60 = vmul.f32 %v1891_v40, %v506_v59 }
 0x52f   :  { %515 = vrot.lane.b32.xlu1 %v510_v60, %s1994_s14 }
 0x531   :  { %523 = vrot.lane.b32.xlu0 %v497_v47, %s1997_s22 }
 0x533   :  { %525 = vrot.lane.b32.xlu1 %v498_v50, %s1997_s22 }
 0x59f   :  { %v514_v61 = vpop.permute.xlu0 %513 }
 0x5a0   :  { %519 = vst.msk [vmem:[#allocation2] sm:$0xff] %vm233_vm0, %v514_v61  ;;  %532 = vst.msk [vmem:[#allocation5 + $0x10] sm:$0xff] %vm233_vm0, %v514_v61 }
 0x5a1   :  { %v516_v62 = vpop.permute.xlu1 %515 }
 0x5a2   :  { %520 = vst.msk [vmem:[#allocation2 + $0x8] sm:$0xff] %vm233_vm0, %v516_v62  ;;  %533 = vst.msk [vmem:[#allocation5 + $0x18] sm:$0xff] %vm233_vm0, %v516_v62 }
 0x5a3   :  { %v524_v63 = vpop.permute.xlu0 %523 }
 0x5a4   :  { %529 = vst.msk [vmem:[#allocation3] sm:$0xff] %vm233_vm0, %v524_v63 }
 0x5a5   :  { %v526_v0 = vpop.permute.xlu1 %525 }
 0x5a6   :  { %530 = vst.msk [vmem:[#allocation3 + $0x8] sm:$0xff] %vm233_vm0, %v526_v0 }
 0x5a7   :  { %v534_v2 = vld [vmem:[#allocation2] sm:$0xff] }
 0x5a9   :  { %v535_v3 = vld [vmem:[#allocation2 + $0x8] sm:$0xff] }
 0x5aa   :  { %v541_v4 = vpack.c.bf16 %v535_v3, %v534_v2  ;;  %v179_v2 = vadd.f32 %v2182_v5, %v2108_v27 }
 0x5ab   :  { %v536_v30 = vld [vmem:[#allocation3] sm:$0xff] }
 0x5ac   :  { %1767 = vmatmul.mubr.msk.bf16.vlgmr.msra.gmra.mrb[16].mxu1 %vm233_vm0, %v541_v4  ;;  %v182_v4 = vadd.f32 %v2184_v7, %v2108_v27 }
 0x5ad   :  { %1774 = vmatprep.mubr.msk.bf16.mxu1 %vm1995_vm2, %v1993_v1  ;;  %v537_v31 = vld [vmem:[#allocation3 + $0x8] sm:$0xff]  ;;  %1771 = vmatpush3.bf16.msra.mxu1 %v1852_v52 }
 0x5ae   :  { %1772 = vmatprep.subr.bf16.mxu1 %v1993_v1 }
 0x5b1   :  { %1773 = vmatpush3.bf16.msra.mxu1 %v1853_v53 }
 0x5b2   :  { %1786 = vmatprep.subr.bf16.mxu1 %v1993_v1 }
 0x67f   :  { %v595_v10 = vpop.f32.mrb[16].mxu1 }
 0x680   :  { %v602_v12 = vadd.f32 %v595_v10, %v171_v9  ;;  %v1768_v13 = vpop.f32.mrb[17].mxu1 }
 0x681   :  { %v598_v14 = vpop.f32.mrb[18].mxu1 }
 0x682   :  { %1896 = vtanh.f32 %v602_v12  ;;  %v603_v20 = vadd.f32 %v598_v14, %v174_v11  ;;  %v1769_v22 = vpop.f32.mrb[19].mxu1  ;;  %v1647_v19 = vmul.f32 -1.442695, %v602_v12 }
 0x684   :  { %1898 = vtanh.f32 %v603_v20  ;;  %v1648_v21 = vmul.f32 -1.442695, %v603_v20 }
 0x685   :  { %1900 = vpow2.f32 %v1647_v19 }
 0x686   :  { %1902 = vpow2.f32 %v1648_v21 }
 0x68c   :  { %v1897_v28 = vpop.eup %1896 }
 0x68d   :  { %630 = vrot.lane.b32.xlu0 %v1897_v28, %s1996_s17 }
 0x68e   :  { %v1899_v29 = vpop.eup %1898 }
 0x68f   :  { %632 = vrot.lane.b32.xlu1 %v1899_v29, %s1996_s17  ;;  %v1901_v32 = vpop.eup %1900 }
 0x690   :  { %v1903_v33 = vpop.eup %1902  ;;  %v610_v34 = vadd.f32 1.0, %v1901_v32 }
 0x691   :  { %620 = vrot.lane.b32.xlu0 %v536_v30, %s1994_s14  ;;  %v611_v35 = vadd.f32 1.0, %v1903_v33 }
 0x692   :  { %1904 = vrcp.f32 %v610_v34 }
 0x693   :  { %622 = vrot.lane.b32.xlu1 %v537_v31, %s1994_s14  ;;  %1906 = vrcp.f32 %v611_v35 }
 0x69c   :  { %v1905_v36 = vpop.eup %1904 }
 0x69d   :  { %v1907_v39 = vpop.eup %1906 }
 0x6ff   :  { %v631_v37 = vpop.permute.xlu0 %630 }
 0x700   :  { %v636_v38 = vmul.f32 %v1905_v36, %v631_v37 }
 0x701   :  { %v633_v40 = vpop.permute.xlu1 %632 }
 0x702   :  { %640 = vrot.lane.b32.xlu0 %v636_v38, %s1994_s14  ;;  %v637_v41 = vmul.f32 %v1907_v39, %v633_v40 }
 0x703   :  { %v621_v42 = vpop.permute.xlu0 %620 }
 0x704   :  { %642 = vrot.lane.b32.xlu1 %v637_v41, %s1994_s14  ;;  %v626_v43 = vmul.f32 %v1905_v36, %v621_v42 }
 0x705   :  { %v623_v44 = vpop.permute.xlu1 %622 }
 0x706   :  { %v627_v47 = vmul.f32 %v1907_v39, %v623_v44 }
 0x774   :  { %v641_v45 = vpop.permute.xlu0 %640 }
 0x775   :  { %v646_v46 = vadd.f32 %v641_v45, %v626_v43  ;;  %v1854_v43 = vld [vmem:[%s2471_s2] sm:$0xff]  }
 0x776   :  { %v643_v48 = vpop.permute.xlu1 %642  ;;  %1779 = vmatpush3.bf16.msra.mxu0 %v1854_v43 }
 0x777   :  { %1908 = vtanh.f32 %v646_v46  ;;  %v647_v49 = vadd.f32 %v643_v48, %v627_v47  ;;  %1780 = vmatprep.subr.bf16.mxu0 %v1993_v1 }
 0x779   :  { %1910 = vtanh.f32 %v647_v49 }
 0x781   :  { %v1909_v50 = vpop.eup %1908 }
 0x782   :  { %652 = vrot.lane.b32.xlu0 %v1909_v50, %s1996_s17 }
 0x783   :  { %v1911_v51 = vpop.eup %1910 }
 0x784   :  { %654 = vrot.lane.b32.xlu1 %v1911_v51, %s1996_s17 }
 0x7f4   :  { %v653_v54 = vpop.permute.xlu0 %652 }
 0x7f5   :  { %v658_v55 = vmul.f32 %v1905_v36, %v653_v54 }
 0x7f6   :  { %v655_v56 = vpop.permute.xlu1 %654 }
 0x7f7   :  { %662 = vrot.lane.b32.xlu0 %v658_v55, %s1994_s14  ;;  %v659_v57 = vmul.f32 %v1907_v39, %v655_v56 }
 0x7f9   :  { %664 = vrot.lane.b32.xlu1 %v659_v57, %s1994_s14 }
 0x7fb   :  { %672 = vrot.lane.b32.xlu0 %v646_v46, %s1997_s22  ;;  %v1855_v46 = vld [vmem:[%s2471_s2 + $0x8] sm:$0xff]  }
 0x7fc   :  { %1781 = vmatpush3.bf16.msra.mxu0 %v1855_v46 }
 0x7fd   :  { %674 = vrot.lane.b32.xlu1 %v647_v49, %s1997_s22  ;;  %1794 = vmatprep.subr.bf16.mxu0 %v1993_v1 }
 0x869   :  { %v663_v58 = vpop.permute.xlu0 %662 }
 0x86a   :  { %668 = vst.msk [vmem:[#allocation2] sm:$0xff] %vm233_vm0, %v663_v58  ;;  %681 = vst.msk [vmem:[#allocation5 + $0x20] sm:$0xff] %vm233_vm0, %v663_v58  ;;  %v187_v58 = vadd.f32 %v2108_v27, %v2087_v16 }
 0x86b   :  { %v665_v59 = vpop.permute.xlu1 %664 }
 0x86c   :  { %669 = vst.msk [vmem:[#allocation2 + $0x8] sm:$0xff] %vm233_vm0, %v665_v59  ;;  %682 = vst.msk [vmem:[#allocation5 + $0x28] sm:$0xff] %vm233_vm0, %v665_v59 }
 0x86d   :  { %v673_v60 = vpop.permute.xlu0 %672 }
 0x86e   :  { %678 = vst.msk [vmem:[#allocation3] sm:$0xff] %vm233_vm0, %v673_v60  ;;  %v190_v60 = vadd.f32 %v2108_v27, %v2091_v18 }
 0x86f   :  { %v675_v61 = vpop.permute.xlu1 %674 }
 0x870   :  { %679 = vst.msk [vmem:[#allocation3 + $0x8] sm:$0xff] %vm233_vm0, %v675_v61 }
 0x871   :  { %v683_v62 = vld [vmem:[#allocation2] sm:$0xff] }
 0x873   :  { %v684_v63 = vld [vmem:[#allocation2 + $0x8] sm:$0xff] }
 0x874   :  { %v690_v0 = vpack.c.bf16 %v684_v63, %v683_v62 }
 0x875   :  { %v685_v14 = vld [vmem:[#allocation3] sm:$0xff] }
 0x876   :  { %1775 = vmatmul.mubr.msk.bf16.vlgmr.msra.gmra.mrb[20].mxu1 %vm233_vm0, %v690_v0 }
 0x877   :  { %1790 = vmatprep.mubr.msk.bf16.mxu1 %vm1995_vm2, %v1993_v1  ;;  %v686_v5 = vld [vmem:[#allocation3 + $0x8] sm:$0xff] }
 0x949   :  { %v744_v3 = vpop.f32.mrb[20].mxu1 }
 0x94a   :  { %v751_v6 = vadd.f32 %v744_v3, %v179_v2  ;;  %v1776_v8 = vpop.f32.mrb[21].mxu1 }
 0x94b   :  { %v747_v9 = vpop.f32.mrb[22].mxu1 }
 0x94c   :  { %1912 = vtanh.f32 %v751_v6  ;;  %v752_v10 = vadd.f32 %v747_v9, %v182_v4  ;;  %v1777_v11 = vpop.f32.mrb[23].mxu1  ;;  %v1652_v7 = vmul.f32 -1.442695, %v751_v6 }
 0x94e   :  { %1914 = vtanh.f32 %v752_v10  ;;  %v1653_v20 = vmul.f32 -1.442695, %v752_v10 }
 0x94f   :  { %1916 = vpow2.f32 %v1652_v7 }
 0x950   :  { %1918 = vpow2.f32 %v1653_v20 }
 0x956   :  { %v1913_v12 = vpop.eup %1912 }
 0x957   :  { %779 = vrot.lane.b32.xlu0 %v1913_v12, %s1996_s17 }
 0x958   :  { %v1915_v13 = vpop.eup %1914 }
 0x959   :  { %781 = vrot.lane.b32.xlu1 %v1915_v13, %s1996_s17  ;;  %v1917_v22 = vpop.eup %1916 }
 0x95a   :  { %v1919_v28 = vpop.eup %1918  ;;  %v759_v29 = vadd.f32 1.0, %v1917_v22 }
 0x95b   :  { %769 = vrot.lane.b32.xlu0 %v685_v14, %s1994_s14  ;;  %v760_v30 = vadd.f32 1.0, %v1919_v28 }
 0x95c   :  { %1920 = vrcp.f32 %v759_v29 }
 0x95d   :  { %771 = vrot.lane.b32.xlu1 %v686_v5, %s1994_s14  ;;  %1922 = vrcp.f32 %v760_v30 }
 0x966   :  { %v1921_v31 = vpop.eup %1920 }
 0x967   :  { %v1923_v32 = vpop.eup %1922 }
 0x9c9   :  { %v780_v19 = vpop.permute.xlu0 %779 }
 0x9ca   :  { %v785_v21 = vmul.f32 %v1921_v31, %v780_v19 }
 0x9cb   :  { %v782_v33 = vpop.permute.xlu1 %781 }
 0x9cc   :  { %789 = vrot.lane.b32.xlu0 %v785_v21, %s1994_s14  ;;  %v786_v34 = vmul.f32 %v1923_v32, %v782_v33 }
 0x9cd   :  { %v770_v35 = vpop.permute.xlu0 %769 }
 0x9ce   :  { %791 = vrot.lane.b32.xlu1 %v786_v34, %s1994_s14  ;;  %v775_v36 = vmul.f32 %v1921_v31, %v770_v35 }
 0x9cf   :  { %v772_v37 = vpop.permute.xlu1 %771 }
 0x9d0   :  { %v776_v40 = vmul.f32 %v1923_v32, %v772_v37  ;;  %v1857_v37 = vld [vmem:[%s2471_s2 + $0x8] sm:$0xff]  }
 0xa3e   :  { %v790_v38 = vpop.permute.xlu0 %789 }
 0xa3f   :  { %v795_v39 = vadd.f32 %v790_v38, %v775_v36  ;;  %v1856_v36 = vld [vmem:[%s2471_s2] sm:$0xff]  }
 0xa40   :  { %v792_v41 = vpop.permute.xlu1 %791  ;;  %1787 = vmatpush3.bf16.msra.mxu1 %v1856_v36 }
 0xa41   :  { %1924 = vtanh.f32 %v795_v39  ;;  %v796_v42 = vadd.f32 %v792_v41, %v776_v40  ;;  %1788 = vmatprep.subr.bf16.mxu1 %v1993_v1 }
 0xa43   :  { %1926 = vtanh.f32 %v796_v42 }
 0xa44   :  { %1789 = vmatpush3.bf16.msra.mxu1 %v1857_v37 }
 0xa45   :  { %1802 = vmatprep.subr.bf16.mxu1 %v1993_v1 }
 0xa4b   :  { %v1925_v44 = vpop.eup %1924 }
 0xa4c   :  { %801 = vrot.lane.b32.xlu0 %v1925_v44, %s1996_s17 }
 0xa4d   :  { %v1927_v45 = vpop.eup %1926 }
 0xa4e   :  { %803 = vrot.lane.b32.xlu1 %v1927_v45, %s1996_s17 }
 0xabe   :  { %v802_v47 = vpop.permute.xlu0 %801 }
 0xabf   :  { %v807_v48 = vmul.f32 %v1921_v31, %v802_v47 }
 0xac0   :  { %v804_v49 = vpop.permute.xlu1 %803 }
 0xac1   :  { %811 = vrot.lane.b32.xlu0 %v807_v48, %s1994_s14  ;;  %v808_v50 = vmul.f32 %v1923_v32, %v804_v49  ;;  %v195_v49 = vadd.f32 %v2085_v15, %v2108_v27 }
 0xac3   :  { %813 = vrot.lane.b32.xlu1 %v808_v50, %s1994_s14 }
 0xac5   :  { %821 = vrot.lane.b32.xlu0 %v795_v39, %s1997_s22 }
 0xac7   :  { %823 = vrot.lane.b32.xlu1 %v796_v42, %s1997_s22 }
 0xb33   :  { %v812_v51 = vpop.permute.xlu0 %811 }
 0xb34   :  { %817 = vst.msk [vmem:[#allocation2] sm:$0xff] %vm233_vm0, %v812_v51  ;;  %830 = vst.msk [vmem:[#allocation5 + $0x30] sm:$0xff] %vm233_vm0, %v812_v51  ;;  %v198_v51 = vadd.f32 %v2089_v17, %v2108_v27 }
 0xb35   :  { %v814_v52 = vpop.permute.xlu1 %813 }
 0xb36   :  { %818 = vst.msk [vmem:[#allocation2 + $0x8] sm:$0xff] %vm233_vm0, %v814_v52  ;;  %831 = vst.msk [vmem:[#allocation5 + $0x38] sm:$0xff] %vm233_vm0, %v814_v52 }
 0xb37   :  { %v822_v53 = vpop.permute.xlu0 %821 }
 0xb38   :  { %827 = vst.msk [vmem:[#allocation3] sm:$0xff] %vm233_vm0, %v822_v53 }
 0xb39   :  { %v824_v54 = vpop.permute.xlu1 %823 }
 0xb3a   :  { %828 = vst.msk [vmem:[#allocation3 + $0x8] sm:$0xff] %vm233_vm0, %v824_v54 }
 0xb3b   :  { %v832_v55 = vld [vmem:[#allocation2] sm:$0xff] }
 0xb3d   :  { %v833_v56 = vld [vmem:[#allocation2 + $0x8] sm:$0xff] }
 0xb3e   :  { %v839_v57 = vpack.c.bf16 %v833_v56, %v832_v55 }
 0xb3f   :  { %v834_v6 = vld [vmem:[#allocation3] sm:$0xff] }
 0xb40   :  { %1783 = vmatmul.mubr.msk.bf16.vlgmr.msra.gmra.mrb[8].mxu0 %vm233_vm0, %v839_v57 }
 0xb41   :  { %1798 = vmatprep.mubr.msk.bf16.mxu0 %vm1995_vm2, %v1993_v1  ;;  %v835_v16 = vld [vmem:[#allocation3 + $0x8] sm:$0xff] }
 0xc13   :  { %v893_v59 = vpop.f32.mrb[8].mxu0 }
 0xc14   :  { %v900_v61 = vadd.f32 %v893_v59, %v187_v58  ;;  %v1784_v62 = vpop.f32.mrb[9].mxu0 }
 0xc15   :  { %v896_v63 = vpop.f32.mrb[10].mxu0 }
 0xc16   :  { %1928 = vtanh.f32 %v900_v61  ;;  %v901_v0 = vadd.f32 %v896_v63, %v190_v60  ;;  %v1785_v2 = vpop.f32.mrb[11].mxu0  ;;  %v1657_v18 = vmul.f32 -1.442695, %v900_v61 }
 0xc18   :  { %1930 = vtanh.f32 %v901_v0  ;;  %v1658_v8 = vmul.f32 -1.442695, %v901_v0 }
 0xc19   :  { %1932 = vpow2.f32 %v1657_v18 }
 0xc1a   :  { %1934 = vpow2.f32 %v1658_v8 }
 0xc20   :  { %v1929_v3 = vpop.eup %1928 }
 0xc21   :  { %928 = vrot.lane.b32.xlu0 %v1929_v3, %s1996_s17 }
 0xc22   :  { %v1931_v4 = vpop.eup %1930 }
 0xc23   :  { %930 = vrot.lane.b32.xlu1 %v1931_v4, %s1996_s17  ;;  %v1933_v9 = vpop.eup %1932 }
 0xc24   :  { %v1935_v10 = vpop.eup %1934  ;;  %v908_v11 = vadd.f32 1.0, %v1933_v9 }
 0xc25   :  { %918 = vrot.lane.b32.xlu0 %v834_v6, %s1994_s14  ;;  %v909_v12 = vadd.f32 1.0, %v1935_v10 }
 0xc26   :  { %1936 = vrcp.f32 %v908_v11 }
 0xc27   :  { %920 = vrot.lane.b32.xlu1 %v835_v16, %s1994_s14  ;;  %1938 = vrcp.f32 %v909_v12 }
 0xc30   :  { %v1937_v13 = vpop.eup %1936 }
 0xc31   :  { %v1939_v7 = vpop.eup %1938 }
 0xc93   :  { %v929_v14 = vpop.permute.xlu0 %928 }
 0xc94   :  { %v934_v5 = vmul.f32 %v1937_v13, %v929_v14 }
 0xc95   :  { %v931_v20 = vpop.permute.xlu1 %930 }
 0xc96   :  { %938 = vrot.lane.b32.xlu0 %v934_v5, %s1994_s14  ;;  %v935_v22 = vmul.f32 %v1939_v7, %v931_v20  ;;  %v1858_v20 = vld [vmem:[%s2471_s2] sm:$0xff]  }
 0xc97   :  { %v919_v28 = vpop.permute.xlu0 %918  ;;  %1795 = vmatpush3.bf16.msra.mxu0 %v1858_v20 }
 0xc98   :  { %940 = vrot.lane.b32.xlu1 %v935_v22, %s1994_s14  ;;  %v924_v29 = vmul.f32 %v1937_v13, %v919_v28  ;;  %1796 = vmatprep.subr.bf16.mxu0 %v1993_v1  ;;  %v1859_v22 = vld [vmem:[%s2471_s2 + $0x8] sm:$0xff]  }
 0xc99   :  { %v921_v30 = vpop.permute.xlu1 %920 }
 0xc9a   :  { %v925_v21 = vmul.f32 %v1939_v7, %v921_v30  ;;  %v1860_v30 = vld [vmem:[%s2473_s4] sm:$0xff]  }
 0xc9b   :  { %1797 = vmatpush3.bf16.msra.mxu0 %v1859_v22 }
 0xc9c   :  { %1810 = vmatprep.subr.bf16.mxu0 %v1860_v30 }
 0xd08   :  { %v939_v31 = vpop.permute.xlu0 %938 }
 0xd09   :  { %v944_v19 = vadd.f32 %v939_v31, %v924_v29 }
 0xd0a   :  { %v941_v32 = vpop.permute.xlu1 %940 }
 0xd0b   :  { %1940 = vtanh.f32 %v944_v19  ;;  %v945_v33 = vadd.f32 %v941_v32, %v925_v21 }
 0xd0d   :  { %1942 = vtanh.f32 %v945_v33 }
 0xd15   :  { %v1941_v34 = vpop.eup %1940 }
 0xd16   :  { %950 = vrot.lane.b32.xlu0 %v1941_v34, %s1996_s17 }
 0xd17   :  { %v1943_v35 = vpop.eup %1942 }
 0xd18   :  { %952 = vrot.lane.b32.xlu1 %v1943_v35, %s1996_s17  ;;  %v1429_v35 = vld [vmem:[#allocation5 + $0x8] sm:$0xff] }
 0xd88   :  { %v951_v38 = vpop.permute.xlu0 %950 }
 0xd89   :  { %v956_v39 = vmul.f32 %v1937_v13, %v951_v38 }
 0xd8a   :  { %v953_v40 = vpop.permute.xlu1 %952 }
 0xd8b   :  { %960 = vrot.lane.b32.xlu0 %v956_v39, %s1994_s14  ;;  %v957_v41 = vmul.f32 %v1939_v7, %v953_v40  ;;  %v1428_v39 = vld [vmem:[#allocation5] sm:$0xff]  ;;  %v1861_v40 = vld [vmem:[%s2473_s4 + $0x8] sm:$0xff]  }
 0xd8d   :  { %962 = vrot.lane.b32.xlu1 %v957_v41, %s1994_s14  ;;  %v1444_v41 = vpack.c.bf16 %v1429_v35, %v1428_v39 }
 0xd8f   :  { %970 = vrot.lane.b32.xlu0 %v944_v19, %s1997_s22 }
 0xd91   :  { %972 = vrot.lane.b32.xlu1 %v945_v33, %s1997_s22 }
 0xdfd   :  { %v961_v42 = vpop.permute.xlu0 %960 }
 0xdfe   :  { %966 = vst.msk [vmem:[#allocation2] sm:$0xff] %vm233_vm0, %v961_v42  ;;  %979 = vst.msk [vmem:[#allocation5 + $0x40] sm:$0xff] %vm233_vm0, %v961_v42  ;;  %v1431_v42 = vld [vmem:[#allocation5 + $0x18] sm:$0xff] }
 0xdff   :  { %v963_v43 = vpop.permute.xlu1 %962 }
 0xe00   :  { %967 = vst.msk [vmem:[#allocation2 + $0x8] sm:$0xff] %vm233_vm0, %v963_v43  ;;  %980 = vst.msk [vmem:[#allocation5 + $0x48] sm:$0xff] %vm233_vm0, %v963_v43  ;;  %v1433_v43 = vld [vmem:[#allocation5 + $0x28] sm:$0xff] }
 0xe01   :  { %v971_v44 = vpop.permute.xlu0 %970 }
 0xe02   :  { %976 = vst.msk [vmem:[#allocation3] sm:$0xff] %vm233_vm0, %v971_v44  ;;  %v1430_v44 = vld [vmem:[#allocation5 + $0x10] sm:$0xff] }
 0xe03   :  { %v973_v45 = vpop.permute.xlu1 %972 }
 0xe04   :  { %977 = vst.msk [vmem:[#allocation3 + $0x8] sm:$0xff] %vm233_vm0, %v973_v45  ;;  %v1445_v45 = vpack.c.bf16 %v1431_v42, %v1430_v44 }
 0xe05   :  { %v981_v46 = vld [vmem:[#allocation2] sm:$0xff] }
 0xe07   :  { %v982_v47 = vld [vmem:[#allocation2 + $0x8] sm:$0xff] }
 0xe08   :  { %v988_v48 = vpack.c.bf16 %v982_v47, %v981_v46  ;;  %v1432_v46 = vld [vmem:[#allocation5 + $0x20] sm:$0xff] }
 0xe09   :  { %v983_v59 = vld [vmem:[#allocation3] sm:$0xff]  ;;  %v1446_v47 = vpack.c.bf16 %v1433_v43, %v1432_v46 }
 0xe0a   :  { %1791 = vmatmul.mubr.msk.bf16.vlgmr.msra.gmra.mrb[24].mxu1 %vm233_vm0, %v988_v48  ;;  %v1435_v48 = vld [vmem:[#allocation5 + $0x38] sm:$0xff] }
 0xe0b   :  { %1806 = vmatprep.mubr.msk.bf16.mxu1 %vm1995_vm2, %v1993_v1  ;;  %v984_v15 = vld [vmem:[#allocation3 + $0x8] sm:$0xff] }
 0xedd   :  { %v1042_v50 = vpop.f32.mrb[24].mxu1 }
 0xede   :  { %v1049_v52 = vadd.f32 %v1042_v50, %v195_v49  ;;  %v1792_v53 = vpop.f32.mrb[25].mxu1  ;;  %v1437_v49 = vld [vmem:[#allocation5 + $0x48] sm:$0xff]  ;;  %v1434_v50 = vld [vmem:[#allocation5 + $0x30] sm:$0xff] }
 0xedf   :  { %v1045_v54 = vpop.f32.mrb[26].mxu1 }
 0xee0   :  { %1944 = vtanh.f32 %v1049_v52  ;;  %v1050_v55 = vadd.f32 %v1045_v54, %v198_v51  ;;  %v1793_v56 = vpop.f32.mrb[27].mxu1  ;;  %v1662_v17 = vmul.f32 -1.442695, %v1049_v52  ;;  %v1447_v51 = vpack.c.bf16 %v1435_v48, %v1434_v50  ;;  %v1436_v52 = vld [vmem:[#allocation5 + $0x40] sm:$0xff] }
 0xee1   :  { %v1448_v53 = vpack.c.bf16 %v1437_v49, %v1436_v52 }
 0xee2   :  { %1946 = vtanh.f32 %v1050_v55  ;;  %v1663_v27 = vmul.f32 -1.442695, %v1050_v55 }
 0xee3   :  { %1948 = vpow2.f32 %v1662_v17 }
 0xee4   :  { %1950 = vpow2.f32 %v1663_v27 }
 0xeea   :  { %v1945_v57 = vpop.eup %1944 }
 0xeeb   :  { %1077 = vrot.lane.b32.xlu0 %v1945_v57, %s1996_s17  ;;  %v2328_v57 = vld [vmem:[%s2472_s3] ss:$0 sm:$0xff] }
 0xeec   :  { %v1947_v58 = vpop.eup %1946 }
 0xeed   :  { %1079 = vrot.lane.b32.xlu1 %v1947_v58, %s1996_s17  ;;  %v1949_v60 = vpop.eup %1948  ;;  %v203_v58 = vadd.f32 %v2328_v57, %v2099_v24 }
 0xeee   :  { %v1951_v61 = vpop.eup %1950  ;;  %v1057_v62 = vadd.f32 1.0, %v1949_v60 }
 0xeef   :  { %1067 = vrot.lane.b32.xlu0 %v983_v59, %s1994_s14  ;;  %v1058_v63 = vadd.f32 1.0, %v1951_v61 }
 0xef0   :  { %1952 = vrcp.f32 %v1057_v62 }
 0xef1   :  { %1069 = vrot.lane.b32.xlu1 %v984_v15, %s1994_s14  ;;  %1954 = vrcp.f32 %v1058_v63  ;;  %v206_v15 = vadd.f32 %v2328_v57, %v2103_v26  ;;  %v2337_v63 = vld [vmem:[%s2474_s5] ss:$0 sm:$0xff] }
 0xefa   :  { %v1953_v0 = vpop.eup %1952 }
 0xefb   :  { %v1955_v4 = vpop.eup %1954 }
 0xf5d   :  { %v1078_v2 = vpop.permute.xlu0 %1077 }
 0xf5e   :  { %v1083_v3 = vmul.f32 %v1953_v0, %v1078_v2 }
 0xf5f   :  { %v1080_v6 = vpop.permute.xlu1 %1079 }
 0xf60   :  { %1087 = vrot.lane.b32.xlu0 %v1083_v3, %s1994_s14  ;;  %v1084_v16 = vmul.f32 %v1955_v4, %v1080_v6 }
 0xf61   :  { %v1068_v18 = vpop.permute.xlu0 %1067 }
 0xf62   :  { %1089 = vrot.lane.b32.xlu1 %v1084_v16, %s1994_s14  ;;  %v1073_v8 = vmul.f32 %v1953_v0, %v1068_v18 }
 0xf63   :  { %v1070_v9 = vpop.permute.xlu1 %1069 }
 0xf64   :  { %v1074_v12 = vmul.f32 %v1955_v4, %v1070_v9 }
 0xfd2   :  { %v1088_v10 = vpop.permute.xlu0 %1087 }
 0xfd3   :  { %v1093_v11 = vadd.f32 %v1088_v10, %v1073_v8 }
 0xfd4   :  { %v1090_v13 = vpop.permute.xlu1 %1089 }
 0xfd5   :  { %1956 = vtanh.f32 %v1093_v11  ;;  %v1094_v14 = vadd.f32 %v1090_v13, %v1074_v12 }
 0xfd7   :  { %1958 = vtanh.f32 %v1094_v14 }
 0xfdf   :  { %v1957_v5 = vpop.eup %1956 }
 0xfe0   :  { %1099 = vrot.lane.b32.xlu0 %v1957_v5, %s1996_s17 }
 0xfe1   :  { %v1959_v7 = vpop.eup %1958 }
 0xfe2   :  { %1101 = vrot.lane.b32.xlu1 %v1959_v7, %s1996_s17 }
0x1052   :  { %v1100_v28 = vpop.permute.xlu0 %1099 }
0x1053   :  { %v1105_v29 = vmul.f32 %v1953_v0, %v1100_v28 }
0x1054   :  { %v1102_v31 = vpop.permute.xlu1 %1101 }
0x1055   :  { %1109 = vrot.lane.b32.xlu0 %v1105_v29, %s1994_s14  ;;  %v1106_v19 = vmul.f32 %v1955_v4, %v1102_v31 }
0x1057   :  { %1111 = vrot.lane.b32.xlu1 %v1106_v19, %s1994_s14 }
0x1059   :  { %1119 = vrot.lane.b32.xlu0 %v1093_v11, %s1997_s22 }
0x105b   :  { %1121 = vrot.lane.b32.xlu1 %v1094_v14, %s1997_s22 }
0x10c7   :  { %v1110_v21 = vpop.permute.xlu0 %1109 }
0x10c8   :  { %1115 = vst.msk [vmem:[#allocation2] sm:$0xff] %vm233_vm0, %v1110_v21  ;;  %1128 = vst.msk [vmem:[#allocation5 + $0x50] sm:$0xff] %vm233_vm0, %v1110_v21 }
0x10c9   :  { %v1112_v32 = vpop.permute.xlu1 %1111 }
0x10ca   :  { %1116 = vst.msk [vmem:[#allocation2 + $0x8] sm:$0xff] %vm233_vm0, %v1112_v32  ;;  %1129 = vst.msk [vmem:[#allocation5 + $0x58] sm:$0xff] %vm233_vm0, %v1112_v32 }
0x10cb   :  { %v1120_v33 = vpop.permute.xlu0 %1119 }
0x10cc   :  { %1125 = vst.msk [vmem:[#allocation3] sm:$0xff] %vm233_vm0, %v1120_v33 }
0x10cd   :  { %v1122_v34 = vpop.permute.xlu1 %1121 }
0x10ce   :  { %1126 = vst.msk [vmem:[#allocation3 + $0x8] sm:$0xff] %vm233_vm0, %v1122_v34 }
0x10cf   :  { %v1130_v36 = vld [vmem:[#allocation2] sm:$0xff]  ;;  %v1438_v55 = vld [vmem:[#allocation5 + $0x50] sm:$0xff] }
0x10d1   :  { %v1131_v37 = vld [vmem:[#allocation2 + $0x8] sm:$0xff]  ;;  %v1439_v54 = vld [vmem:[#allocation5 + $0x58] sm:$0xff] }
0x10d2   :  { %v1137_v38 = vpack.c.bf16 %v1131_v37, %v1130_v36  ;;  %v1449_v56 = vpack.c.bf16 %v1439_v54, %v1438_v55 }
0x10d3   :  { %v1132_v12 = vld [vmem:[#allocation3] sm:$0xff] }
0x10d4   :  { %1799 = vmatmul.mubr.msk.bf16.vlgmr.msra.gmra.mrb[12].mxu0 %vm233_vm0, %v1137_v38 }
0x10d5   :  { %1811 = vmatpush3.bf16.msra.mxu0 %v1860_v30  ;;  %1814 = vmatprep.mubr.msk.bf16.mxu0 %vm233_vm0, %v1444_v41  ;;  %v1133_v22 = vld [vmem:[#allocation3 + $0x8] sm:$0xff] }
0x10d6   :  { %1812 = vmatprep.subr.bf16.mxu0 %v1861_v40 }
0x10d9   :  { %1813 = vmatpush3.bf16.msra.mxu0 %v1861_v40 }
0x10dc   :  { %1815 = vmatmul.mubr.msk.bf16.vlgmr.msra.gmra.mrb[16].mxu0 %vm233_vm0, %v1445_v45 }
0x10dd   :  { %1818 = vmatprep.mubr.msk.bf16.mxu0 %vm233_vm0, %v1446_v47 }
0x10e4   :  { %1819 = vmatmul.mubr.msk.bf16.gmra.mrb[20].mxu0 %vm233_vm0, %v1447_v51 }
0x10e5   :  { %1822 = vmatprep.mubr.msk.bf16.mxu0 %vm233_vm0, %v1448_v53 }
0x10ec   :  { %1823 = vmatmul.mubr.msk.bf16.gmra.mrb[24].mxu0 %vm233_vm0, %v1449_v56  ;;  %v1862_v56 = vld [vmem:[%s2471_s2] sm:$0xff]  }
0x10ed   :  { %1803 = vmatpush3.bf16.msra.mxu1 %v1862_v56 }
0x10ee   :  { %1804 = vmatprep.subr.bf16.mxu1 %v1993_v1 }
0x11a7   :  { %v1191_v59 = vpop.f32.mrb[12].mxu0 }
0x11a8   :  { %v1198_v17 = vadd.f32 %v1191_v59, %v203_v58  ;;  %v1800_v27 = vpop.f32.mrb[13].mxu0  ;;  %v1863_v58 = vld [vmem:[%s2471_s2 + $0x8] sm:$0xff]  }
0x11a9   :  { %v1194_v60 = vpop.f32.mrb[14].mxu0  ;;  %1805 = vmatpush3.bf16.msra.mxu1 %v1863_v58 }
0x11aa   :  { %1960 = vtanh.f32 %v1198_v17  ;;  %v1199_v61 = vadd.f32 %v1194_v60, %v206_v15  ;;  %v1801_v62 = vpop.f32.mrb[15].mxu0  ;;  %v1667_v34 = vmul.f32 -1.442695, %v1198_v17 }
0x11ac   :  { %1962 = vtanh.f32 %v1199_v61  ;;  %v1668_v35 = vmul.f32 -1.442695, %v1199_v61 }
0x11ad   :  { %1964 = vpow2.f32 %v1667_v34 }
0x11ae   :  { %1966 = vpow2.f32 %v1668_v35 }
0x11af   :  { %v1816_v0 = vpop.f32.mrb[16].mxu0 }
0x11b0   :  { %v1542_v2 = vadd.f32 %v1816_v0, %v2337_v63  ;;  %v1533_v24 = vpop.f32.mrb[17].mxu0 }
0x11b1   :  { %v1534_v3 = vadd.f32 %v2337_v63, %v1533_v24  ;;  %v1817_v4 = vpop.f32.mrb[18].mxu0 }
0x11b2   :  { %1598 = vst.msk [vmem:[%s2475_s6 + $0x10] sm:$0xff] %vm95_vm1, %v1542_v2  ;;  %v1545_v26 = vadd.f32 %v1817_v4, %v2337_v63  ;;  %v1536_v6 = vpop.f32.mrb[19].mxu0 }
0x11b3   :  { %1596 = vst.msk [vmem:[%s2475_s6] sm:$0xff] %vm95_vm1, %v1534_v3  ;;  %v1537_v16 = vadd.f32 %v2337_v63, %v1536_v6  ;;  %v211_v6 = vadd.f32 %v2328_v57, %v2097_v23 }
0x11b4   :  { %v1961_v18 = vpop.eup %1960  ;;  %1599 = vst.msk [vmem:[%s2475_s6 + $0x18] sm:$0xff] %vm95_vm1, %v1545_v26 }
0x11b5   :  { %1597 = vst.msk [vmem:[%s2475_s6 + $0x8] sm:$0xff] %vm95_vm1, %v1537_v16  ;;  %1226 = vrot.lane.b32.xlu0 %v1961_v18, %s1996_s17  ;;  %v214_v18 = vadd.f32 %v2328_v57, %v2101_v25 }
0x11b6   :  { %v1963_v8 = vpop.eup %1962 }
0x11b7   :  { %v1820_v9 = vpop.f32.mrb[20].mxu0  ;;  %1228 = vrot.lane.b32.xlu1 %v1963_v8, %s1996_s17  ;;  %v1965_v36 = vpop.eup %1964 }
0x11b8   :  { %v1558_v10 = vadd.f32 %v1820_v9, %v2337_v63  ;;  %v1549_v11 = vpop.f32.mrb[21].mxu0  ;;  %v1967_v37 = vpop.eup %1966  ;;  %v1206_v38 = vadd.f32 1.0, %v1965_v36 }
0x11b9   :  { %v1550_v13 = vadd.f32 %v2337_v63, %v1549_v11  ;;  %v1821_v14 = vpop.f32.mrb[22].mxu0  ;;  %1216 = vrot.lane.b32.xlu0 %v1132_v12, %s1994_s14  ;;  %v1207_v39 = vadd.f32 1.0, %v1967_v37 }
0x11ba   :  { %1602 = vst.msk [vmem:[%s2475_s6 + $0x30] sm:$0xff] %vm95_vm1, %v1558_v10  ;;  %v1561_v5 = vadd.f32 %v1821_v14, %v2337_v63  ;;  %v1552_v7 = vpop.f32.mrb[23].mxu0  ;;  %1968 = vrcp.f32 %v1206_v38 }
0x11bb   :  { %1600 = vst.msk [vmem:[%s2475_s6 + $0x20] sm:$0xff] %vm95_vm1, %v1550_v13  ;;  %v1553_v20 = vadd.f32 %v2337_v63, %v1552_v7  ;;  %1218 = vrot.lane.b32.xlu1 %v1133_v22, %s1994_s14  ;;  %1970 = vrcp.f32 %v1207_v39 }
0x11bc   :  { %1603 = vst.msk [vmem:[%s2475_s6 + $0x38] sm:$0xff] %vm95_vm1, %v1561_v5 }
0x11bd   :  { %1601 = vst.msk [vmem:[%s2475_s6 + $0x28] sm:$0xff] %vm95_vm1, %v1553_v20 }
0x11bf   :  { %v1824_v28 = vpop.f32.mrb[24].mxu0 }
0x11c0   :  { %v1574_v29 = vadd.f32 %v1824_v28, %v2337_v63  ;;  %v1565_v30 = vpop.f32.mrb[25].mxu0 }
0x11c1   :  { %v1566_v31 = vadd.f32 %v2337_v63, %v1565_v30  ;;  %v1825_v19 = vpop.f32.mrb[26].mxu0 }
0x11c2   :  { %1606 = vst.msk [vmem:[%s2475_s6 + $0x50] sm:$0xff] %vm95_vm1, %v1574_v29  ;;  %v1577_v21 = vadd.f32 %v1825_v19, %v2337_v63  ;;  %v1568_v32 = vpop.f32.mrb[27].mxu0 }
0x11c3   :  { %1604 = vst.msk [vmem:[%s2475_s6 + $0x40] sm:$0xff] %vm95_vm1, %v1566_v31  ;;  %v1569_v33 = vadd.f32 %v2337_v63, %v1568_v32 }
0x11c4   :  { %1607 = vst.msk [vmem:[%s2475_s6 + $0x58] sm:$0xff] %vm95_vm1, %v1577_v21  ;;  %v1969_v40 = vpop.eup %1968 }
0x11c5   :  { %1605 = vst.msk [vmem:[%s2475_s6 + $0x48] sm:$0xff] %vm95_vm1, %v1569_v33  ;;  %v1971_v43 = vpop.eup %1970 }
0x1227   :  { %v1227_v41 = vpop.permute.xlu0 %1226 }
0x1228   :  { %v1232_v42 = vmul.f32 %v1969_v40, %v1227_v41 }
0x1229   :  { %v1229_v44 = vpop.permute.xlu1 %1228 }
0x122a   :  { %1236 = vrot.lane.b32.xlu0 %v1232_v42, %s1994_s14  ;;  %v1233_v45 = vmul.f32 %v1971_v43, %v1229_v44 }
0x122b   :  { %v1217_v46 = vpop.permute.xlu0 %1216 }
0x122c   :  { %1238 = vrot.lane.b32.xlu1 %v1233_v45, %s1994_s14  ;;  %v1222_v47 = vmul.f32 %v1969_v40, %v1217_v46 }
0x122d   :  { %v1219_v48 = vpop.permute.xlu1 %1218 }
0x122e   :  { %v1223_v51 = vmul.f32 %v1971_v43, %v1219_v48 }
0x129c   :  { %v1237_v49 = vpop.permute.xlu0 %1236 }
0x129d   :  { %v1242_v50 = vadd.f32 %v1237_v49, %v1222_v47 }
0x129e   :  { %v1239_v52 = vpop.permute.xlu1 %1238 }
0x129f   :  { %1972 = vtanh.f32 %v1242_v50  ;;  %v1243_v53 = vadd.f32 %v1239_v52, %v1223_v51 }
0x12a1   :  { %1974 = vtanh.f32 %v1243_v53 }
0x12a9   :  { %v1973_v54 = vpop.eup %1972 }
0x12aa   :  { %1248 = vrot.lane.b32.xlu0 %v1973_v54, %s1996_s17 }
0x12ab   :  { %v1975_v55 = vpop.eup %1974 }
0x12ac   :  { %1250 = vrot.lane.b32.xlu1 %v1975_v55, %s1996_s17 }
0x131c   :  { %v1249_v59 = vpop.permute.xlu0 %1248 }
0x131d   :  { %v1254_v15 = vmul.f32 %v1969_v40, %v1249_v59 }
0x131e   :  { %v1251_v17 = vpop.permute.xlu1 %1250 }
0x131f   :  { %1258 = vrot.lane.b32.xlu0 %v1254_v15, %s1994_s14  ;;  %v1255_v27 = vmul.f32 %v1971_v43, %v1251_v17 }
0x1321   :  { %1260 = vrot.lane.b32.xlu1 %v1255_v27, %s1994_s14 }
0x1323   :  { %1268 = vrot.lane.b32.xlu0 %v1242_v50, %s1997_s22 }
0x1325   :  { %1270 = vrot.lane.b32.xlu1 %v1243_v53, %s1997_s22 }
0x1391   :  { %v1259_v60 = vpop.permute.xlu0 %1258 }
0x1392   :  { %1264 = vst.msk [vmem:[#allocation2] sm:$0xff] %vm233_vm0, %v1259_v60  ;;  %1277 = vst.msk [vmem:[#allocation5 + $0x60] sm:$0xff] %vm233_vm0, %v1259_v60 }
0x1393   :  { %v1261_v1 = vpop.permute.xlu1 %1260 }
0x1394   :  { %1265 = vst.msk [vmem:[#allocation2 + $0x8] sm:$0xff] %vm233_vm0, %v1261_v1  ;;  %1278 = vst.msk [vmem:[#allocation5 + $0x68] sm:$0xff] %vm233_vm0, %v1261_v1 }
0x1395   :  { %v1269_v61 = vpop.permute.xlu0 %1268 }
0x1396   :  { %1274 = vst.msk [vmem:[#allocation3] sm:$0xff] %vm233_vm0, %v1269_v61 }
0x1397   :  { %v1271_v62 = vpop.permute.xlu1 %1270 }
0x1398   :  { %1275 = vst.msk [vmem:[#allocation3 + $0x8] sm:$0xff] %vm233_vm0, %v1271_v62 }
0x1399   :  { %v1279_v0 = vld [vmem:[#allocation2] sm:$0xff] }
0x139a   :  { %v1440_v24 = vld [vmem:[#allocation5 + $0x60] sm:$0xff] }
0x139b   :  { %v1280_v2 = vld [vmem:[#allocation2 + $0x8] sm:$0xff] }
0x139c   :  { %v1441_v3 = vld [vmem:[#allocation5 + $0x68] sm:$0xff]  ;;  %v1286_v4 = vpack.c.bf16 %v1280_v2, %v1279_v0 }
0x139d   :  { %v1450_v26 = vpack.c.bf16 %v1441_v3, %v1440_v24  ;;  %v1281_v5 = vld [vmem:[#allocation3] sm:$0xff] }
0x139e   :  { %1807 = vmatmul.mubr.msk.bf16.vlgmr.msra.gmra.mrb[28].mxu1 %vm233_vm0, %v1286_v4 }
0x139f   :  { %1826 = vmatprep.mubr.msk.bf16.mxu0 %vm233_vm0, %v1450_v26  ;;  %v1282_v23 = vld [vmem:[#allocation3 + $0x8] sm:$0xff] }
0x1471   :  { %v1340_v16 = vpop.f32.mrb[28].mxu1 }
0x1472   :  { %v1347_v8 = vadd.f32 %v1340_v16, %v211_v6  ;;  %v1808_v9 = vpop.f32.mrb[29].mxu1 }
0x1473   :  { %v1343_v10 = vpop.f32.mrb[30].mxu1 }
0x1474   :  { %1976 = vtanh.f32 %v1347_v8  ;;  %v1348_v11 = vadd.f32 %v1343_v10, %v214_v18  ;;  %v1809_v12 = vpop.f32.mrb[31].mxu1  ;;  %v1672_v25 = vmul.f32 -1.442695, %v1347_v8 }
0x1476   :  { %1978 = vtanh.f32 %v1348_v11  ;;  %v1673_v57 = vmul.f32 -1.442695, %v1348_v11 }
0x1477   :  { %1980 = vpow2.f32 %v1672_v25 }
0x1478   :  { %1982 = vpow2.f32 %v1673_v57 }
0x147e   :  { %v1977_v13 = vpop.eup %1976 }
0x147f   :  { %1375 = vrot.lane.b32.xlu0 %v1977_v13, %s1996_s17 }
0x1480   :  { %v1979_v14 = vpop.eup %1978 }
0x1481   :  { %1377 = vrot.lane.b32.xlu1 %v1979_v14, %s1996_s17  ;;  %v1981_v7 = vpop.eup %1980 }
0x1482   :  { %v1983_v20 = vpop.eup %1982  ;;  %v1355_v22 = vadd.f32 1.0, %v1981_v7 }
0x1483   :  { %1365 = vrot.lane.b32.xlu0 %v1281_v5, %s1994_s14  ;;  %v1356_v28 = vadd.f32 1.0, %v1983_v20 }
0x1484   :  { %1984 = vrcp.f32 %v1355_v22 }
0x1485   :  { %1367 = vrot.lane.b32.xlu1 %v1282_v23, %s1994_s14  ;;  %1986 = vrcp.f32 %v1356_v28 }
0x148e   :  { %v1985_v29 = vpop.eup %1984 }
0x148f   :  { %v1987_v19 = vpop.eup %1986 }
0x14f1   :  { %v1376_v30 = vpop.permute.xlu0 %1375 }
0x14f2   :  { %v1381_v31 = vmul.f32 %v1985_v29, %v1376_v30 }
0x14f3   :  { %v1378_v21 = vpop.permute.xlu1 %1377 }
0x14f4   :  { %1385 = vrot.lane.b32.xlu0 %v1381_v31, %s1994_s14  ;;  %v1382_v32 = vmul.f32 %v1987_v19, %v1378_v21 }
0x14f5   :  { %v1366_v33 = vpop.permute.xlu0 %1365 }
0x14f6   :  { %1387 = vrot.lane.b32.xlu1 %v1382_v32, %s1994_s14  ;;  %v1371_v34 = vmul.f32 %v1985_v29, %v1366_v33 }
0x14f7   :  { %v1368_v35 = vpop.permute.xlu1 %1367 }
0x14f8   :  { %v1372_v38 = vmul.f32 %v1987_v19, %v1368_v35 }
0x1566   :  { %v1386_v36 = vpop.permute.xlu0 %1385 }
0x1567   :  { %v1391_v37 = vadd.f32 %v1386_v36, %v1371_v34 }
0x1568   :  { %v1388_v39 = vpop.permute.xlu1 %1387 }
0x1569   :  { %1988 = vtanh.f32 %v1391_v37  ;;  %v1392_v40 = vadd.f32 %v1388_v39, %v1372_v38 }
0x156b   :  { %1990 = vtanh.f32 %v1392_v40 }
0x1573   :  { %v1989_v41 = vpop.eup %1988 }
0x1574   :  { %1397 = vrot.lane.b32.xlu0 %v1989_v41, %s1996_s17 }
0x1575   :  { %v1991_v42 = vpop.eup %1990 }
0x1576   :  { %1399 = vrot.lane.b32.xlu1 %v1991_v42, %s1996_s17 }
0x15e6   :  { %v1398_v43 = vpop.permute.xlu0 %1397 }
0x15e7   :  { %v1403_v44 = vmul.f32 %v1985_v29, %v1398_v43 }
0x15e8   :  { %v1400_v45 = vpop.permute.xlu1 %1399 }
0x15e9   :  { %1407 = vrot.lane.b32.xlu0 %v1403_v44, %s1994_s14  ;;  %v1404_v46 = vmul.f32 %v1987_v19, %v1400_v45 }
0x15eb   :  { %1409 = vrot.lane.b32.xlu1 %v1404_v46, %s1994_s14 }
0x15ed   :  { %1417 = vrot.lane.b32.xlu0 %v1391_v37, %s1997_s22 }
0x15ef   :  { %1419 = vrot.lane.b32.xlu1 %v1392_v40, %s1997_s22 }
0x165b   :  { %v1408_v47 = vpop.permute.xlu0 %1407 }
0x165c   :  { %1413 = vst.msk [vmem:[#allocation2] sm:$0xff] %vm233_vm0, %v1408_v47  ;;  %1426 = vst.msk [vmem:[#allocation5 + $0x70] sm:$0xff] %vm233_vm0, %v1408_v47 }
0x165d   :  { %v1410_v48 = vpop.permute.xlu1 %1409 }
0x165e   :  { %1414 = vst.msk [vmem:[#allocation2 + $0x8] sm:$0xff] %vm233_vm0, %v1410_v48  ;;  %1427 = vst.msk [vmem:[#allocation5 + $0x78] sm:$0xff] %vm233_vm0, %v1410_v48 }
0x165f   :  { %v1418_v49 = vpop.permute.xlu0 %1417 }
0x1660   :  { %1423 = vst.msk [vmem:[#allocation3] sm:$0xff] %vm233_vm0, %v1418_v49 }
0x1661   :  { %v1420_v50 = vpop.permute.xlu1 %1419 }
0x1662   :  { %1424 = vst.msk [vmem:[#allocation3 + $0x8] sm:$0xff] %vm233_vm0, %v1420_v50 }
0x1663   :  { %v1442_v51 = vld [vmem:[#allocation5 + $0x70] sm:$0xff] }
0x1665   :  { %v1443_v52 = vld [vmem:[#allocation5 + $0x78] sm:$0xff] }
0x1666   :  { %v1451_v53 = vpack.c.bf16 %v1443_v52, %v1442_v51 }
0x1668   :  { %1827 = vmatmul.mubr.msk.bf16.gmra.mrb[28].mxu0 %vm233_vm0, %v1451_v53 }
0x173b   :  { %v1828_v54 = vpop.f32.mrb[28].mxu0 }
0x173c   :  { %v1590_v55 = vadd.f32 %v1828_v54, %v2337_v63  ;;  %v1581_v56 = vpop.f32.mrb[29].mxu0 }
0x173d   :  { %v1582_v58 = vadd.f32 %v2337_v63, %v1581_v56  ;;  %v1829_v59 = vpop.f32.mrb[30].mxu0 }
0x173e   :  { %1610 = vst.msk [vmem:[%s2475_s6 + $0x70] sm:$0xff] %vm95_vm1, %v1590_v55  ;;  %v1593_v15 = vadd.f32 %v1829_v59, %v2337_v63  ;;  %v1584_v17 = vpop.f32.mrb[31].mxu0 }
0x173f   :  { %1608 = vst.msk [vmem:[%s2475_s6 + $0x60] sm:$0xff] %vm95_vm1, %v1582_v58  ;;  %v1585_v27 = vadd.f32 %v2337_v63, %v1584_v17 }
0x1740   :  { %1611 = vst.msk [vmem:[%s2475_s6 + $0x78] sm:$0xff] %vm95_vm1, %v1593_v15 }
0x1741   :  { %1609 = vst.msk [vmem:[%s2475_s6 + $0x68] sm:$0xff] %vm95_vm1, %v1585_v27 }

</bundles_post_ra>
